<compile_context>
chip_gen: v6e
topology: v6e:2x2x1
jax: 0.10.0
libtpu: 0.0.40
codegen_flags: <defaults>
</compile_context>

<pallas_src>
import functools

import jax
import jax.numpy as jnp
from jax import lax
from jax.experimental import pallas as pl
from jax.experimental.pallas import tpu as pltpu


# ----------------------------- Pallas kernels ------------------------------ #

def _conv_taps(xh, w_ref, *, W, PAD, TP):
    """3x3 'same' conv on a haloed, flat-pixel, channel-major tile.

    xh    : (Ci, TP + 2*PAD) value; pixel index p = h*W + w, with a PAD-pixel
            halo on both sides (matmul dtype, e.g. bf16).
    w_ref : (9, Co, Ci) weights ref, tap index t = ky*3 + kx.
    Returns a (Co, TP) float32 accumulator.

    Each tap is a *static* lane-offset slice of the haloed slab (no patch
    matrix, no column-slab stores).  Horizontal taps that would wrap into the
    neighbouring row under the flat pixel ordering are zeroed with a lane
    mask; vertical out-of-image taps read the zero halo provided upstream.
    """
    zero = jnp.zeros((), xh.dtype)
    Co = w_ref.shape[1]

    # destination-pixel lane masks for the horizontal taps
    wpos = lax.broadcasted_iota(jnp.int32, (1, TP), 1) % W
    mask_l = wpos != 0          # kx == 0 reads w-1 -> invalid at w == 0
    mask_r = wpos != (W - 1)    # kx == 2 reads w+1 -> invalid at w == W-1

    acc = jnp.zeros((Co, TP), jnp.float32)
    for t in range(9):                                    # static unroll
        ky, kx = divmod(t, 3)
        s = (ky - 1) * W + (kx - 1)
        tap = xh[:, PAD + s: PAD + s + TP]                # (Ci, TP) lane-dense
        if kx == 0:
            tap = jnp.where(mask_l, tap, zero)
        elif kx == 2:
            tap = jnp.where(mask_r, tap, zero)
        acc = acc + jnp.dot(w_ref[t], tap,
                            preferred_element_type=jnp.float32)
    return acc


def _partial_stats(acc):
    # per-tile partial BatchNorm stats: (Co, 2) = [sum, sum of squares]
    s1 = jnp.sum(acc, axis=1, keepdims=True)
    s2 = jnp.sum(acc * acc, axis=1, keepdims=True)
    return jnp.concatenate([s1, s2], axis=1)


def _conv1_kernel(x_ref, w_ref, y_ref, st_ref, *, W, PAD, TP):
    # x_ref : (1, Cin, TP + 2*PAD) haloed input tile (matmul dtype)
    # y_ref : (1, Cmid, TP) raw conv1 output (f32); st_ref: (1, Cmid, 2)
    acc = _conv_taps(x_ref[0], w_ref, W=W, PAD=PAD, TP=TP)
    y_ref[0] = acc
    st_ref[0] = _partial_stats(acc)


def _bnrelu_conv2_kernel(x_ref, ab_ref, w_ref, y_ref, st_ref, *,
                         W, PAD, TP, R, mm_dtype):
    # x_ref : (1, Cmid, TP + 2*PAD) haloed *raw* conv1 tile (f32)
    # ab_ref: (Cmid, 2)  column0 = BN1 scale, column1 = BN1 shift
    r = pl.program_id(0) % R                 # row-block index within the image
    a = ab_ref[:, 0:1]
    b = ab_ref[:, 1:2]
    z = jnp.maximum(x_ref[0] * a + b, 0.0)   # BN1 + ReLU, fully lane-dense

    # Conv2's zero padding applies to *activations*, so the parts of the halo
    # that fall outside the image (first tile's left halo / last tile's right
    # halo) must be forced to zero after the affine+ReLU.
    lane = lax.broadcasted_iota(jnp.int32, (1, z.shape[1]), 1)
    left_bad = (lane < PAD) & (r == 0)
    right_bad = (lane >= PAD + TP) & (r == R - 1)
    z = jnp.where(left_bad | right_bad, 0.0, z).astype(mm_dtype)

    acc = _conv_taps(z, w_ref, W=W, PAD=PAD, TP=TP)
    y_ref[0] = acc
    st_ref[0] = _partial_stats(acc)


# ------------------------------ JAX glue ----------------------------------- #

def _bn_scale_shift(st, gamma, beta, count, eps=1e-5):
    """st: (G, C, 2) partial [sum, sumsq] -> (C, 2) = [scale, shift] for
    training-mode BatchNorm (biased variance)."""
    tot = jnp.sum(st, axis=0)                              # (C, 2)
    mean = tot[:, 0] / count
    var = jnp.maximum(tot[:, 1] / count - mean * mean, 0.0)
    scale = gamma * lax.rsqrt(var + eps)
    shift = beta - mean * scale
    return jnp.stack([scale, shift], axis=1)               # (C, 2)


def _halo_tiles(x_flat, R, TP, PAD):
    """(N, C, P) -> (N*R, C, TP + 2*PAD) overlapping pixel row-block tiles
    (zero halo at image boundaries, real neighbour rows elsewhere)."""
    N, C, _ = x_flat.shape
    xp = jnp.pad(x_flat, ((0, 0), (0, 0), (PAD, PAD)))
    tiles = [xp[:, :, r * TP: r * TP + TP + 2 * PAD] for r in range(R)]
    return jnp.stack(tiles, axis=1).reshape(N * R, C, TP + 2 * PAD)


def bilinear_upsample_2x_align_corners(x):
    # x: (N, C, H, W) -> (N, C, 2H, 2W); matches nn.Upsample(scale_factor=2,
    # mode='bilinear', align_corners=True)
    _, _, H, W = x.shape
    Hout, Wout = 2 * H, 2 * W

    def grid1d(out_size, in_size):
        if in_size == 1:
            z = jnp.zeros((out_size,), jnp.int32)
            return z, z, jnp.zeros((out_size,), jnp.float32)
        src = jnp.arange(out_size, dtype=jnp.float32) * (in_size - 1) / (out_size - 1)
        i0 = jnp.floor(src).astype(jnp.int32)
        i1 = jnp.minimum(i0 + 1, in_size - 1)
        return i0, i1, src - i0.astype(jnp.float32)

    y0, y1, fy = grid1d(Hout, H)
    x0, x1, fx = grid1d(Wout, W)

    top = jnp.take(x, y0, axis=2)
    bot = jnp.take(x, y1, axis=2)

    def wx(t):
        l = jnp.take(t, x0, axis=3)
        r = jnp.take(t, x1, axis=3)
        return l * (1.0 - fx) + r * fx

    ti, bi = wx(top), wx(bot)
    fy_b = fy[None, None, :, None]
    return ti * (1.0 - fy_b) + bi * fy_b


def up_forward(x1, x2, w1_hwio, g1, b1, w2_hwio, g2, b2,
               matmul_dtype=jnp.bfloat16, row_blocks=2):
    """Up.forward: x1, x2 NCHW; w*_hwio are (3,3,Cin,Cout); g/b are (C,)."""
    # TODO(synk): the gather-based bilinear upsample, diffY/diffX padding and
    # the channel concat stay in XLA glue (they fuse into one prep pass); a
    # Pallas version would need data-dependent DMA gathers for little gain.
    x1u = bilinear_upsample_2x_align_corners(x1)
    diffY = x2.shape[2] - x1u.shape[2]
    diffX = x2.shape[3] - x1u.shape[3]
    if diffY != 0 or diffX != 0:
        x1u = jnp.pad(x1u, ((0, 0), (0, 0),
                            (diffY // 2, diffY - diffY // 2),
                            (diffX // 2, diffX - diffX // 2)))
    x = jnp.concatenate([x2, x1u], axis=1)                 # (N, Cin, H, W)

    N, Cin, H, W = x.shape
    Cmid = w1_hwio.shape[3]
    Cout = w2_hwio.shape[3]
    P = H * W
    R = row_blocks if (row_blocks > 0 and H % row_blocks == 0) else 1
    TP = (H // R) * W                                      # pixels per tile
    PAD = W + 1                                            # 1-row + 1-pixel halo
    TPH = TP + 2 * PAD
    G = N * R
    count = float(N * P)

    # weights: HWIO (3,3,Ci,Co) -> (9, Co, Ci), tap t = ky*3 + kx
    w1 = jnp.transpose(w1_hwio, (0, 1, 3, 2)).reshape(9, Cmid, Cin)
    w2 = jnp.transpose(w2_hwio, (0, 1, 3, 2)).reshape(9, Cout, Cmid)
    w1 = w1.astype(matmul_dtype)
    w2 = w2.astype(matmul_dtype)

    cparams = pltpu.CompilerParams(dimension_semantics=("parallel",))

    # ---- stage 1: conv1 + per-tile partial BN1 stats ----
    x_tiles = _halo_tiles(x.reshape(N, Cin, P), R, TP, PAD).astype(matmul_dtype)
    y1, st1 = pl.pallas_call(
        functools.partial(_conv1_kernel, W=W, PAD=PAD, TP=TP),
        out_shape=(jax.ShapeDtypeStruct((G, Cmid, TP), jnp.float32),
                   jax.ShapeDtypeStruct((G, Cmid, 2), jnp.float32)),
        grid=(G,),
        in_specs=[pl.BlockSpec((1, Cin, TPH), lambda g: (g, 0, 0)),
                  pl.BlockSpec((9, Cmid, Cin), lambda g: (0, 0, 0))],
        out_specs=[pl.BlockSpec((1, Cmid, TP), lambda g: (g, 0, 0)),
                   pl.BlockSpec((1, Cmid, 2), lambda g: (g, 0, 0))],
        compiler_params=cparams,
    )(x_tiles, w1)

    ab1 = _bn_scale_shift(st1, g1, b1, count)              # (Cmid, 2)

    # reassemble (G, Cmid, TP) -> (N, Cmid, P), then halo-re-tile for conv2
    # (the tiles stay raw fp32; BN1 affine + ReLU happens in the kernel).
    y1_img = y1.reshape(N, R, Cmid, TP).transpose(0, 2, 1, 3).reshape(N, Cmid, P)
    y1_tiles = _halo_tiles(y1_img, R, TP, PAD)

    # ---- stage 2: BN1 affine + ReLU + conv2 + partial BN2 stats ----
    y2, st2 = pl.pallas_call(
        functools.partial(_bnrelu_conv2_kernel, W=W, PAD=PAD, TP=TP, R=R,
                          mm_dtype=matmul_dtype),
        out_shape=(jax.ShapeDtypeStruct((G, Cout, TP), jnp.float32),
                   jax.ShapeDtypeStruct((G, Cout, 2), jnp.float32)),
        grid=(G,),
        in_specs=[pl.BlockSpec((1, Cmid, TPH), lambda g: (g, 0, 0)),
                  pl.BlockSpec((Cmid, 2), lambda g: (0, 0)),
                  pl.BlockSpec((9, Cout, Cmid), lambda g: (0, 0, 0))],
        out_specs=[pl.BlockSpec((1, Cout, TP), lambda g: (g, 0, 0)),
                   pl.BlockSpec((1, Cout, 2), lambda g: (g, 0, 0))],
        compiler_params=cparams,
    )(y1_tiles, ab1, w2)

    ab2 = _bn_scale_shift(st2, g2, b2, count)              # (Cout, 2)

    # BN2 affine + ReLU fused into the XLA epilogue; the data is already in
    # NCHW pixel order, so there is no final layout transpose at all.
    y2_img = y2.reshape(N, R, Cout, TP).transpose(0, 2, 1, 3).reshape(N, Cout, H, W)
    a2 = ab2[:, 0].reshape(1, Cout, 1, 1)
    c2 = ab2[:, 1].reshape(1, Cout, 1, 1)
    return jnp.maximum(y2_img * a2 + c2, 0.0)


# --------------------------- reference (JAX) -------------------------------- #

def _double_conv_ref(x_nhwc, w1, g1, b1, w2, g2, b2):
    def conv(x, w):
        return jax.lax.conv_general_dilated(
            x, w, (1, 1), 'SAME', dimension_numbers=('NHWC', 'HWIO', 'NHWC'))

    def bn_relu(y, g, b):
        mean = jnp.mean(y, axis=(0, 1, 2), keepdims=True)
        var = jnp.mean(jnp.square(y - mean), axis=(0, 1, 2), keepdims=True)
        return jnp.maximum((y - mean) * jax.lax.rsqrt(var + 1e-5) * g + b, 0.0)

    y = bn_relu(conv(x_nhwc, w1), g1, b1)
    y = bn_relu(conv(y, w2), g2, b2)
    return y


# --------------------------------- main ------------------------------------- #

if __name__ == "__main__":
    key = jax.random.PRNGKey(0)
    k1, k2, k3, k4, k5, k6, k7, k8 = jax.random.split(key, 8)

    # Up(in_channels=8, skip_channels=4, out_channels=4, bilinear=True)
    N, Cin1, Cskip, Cout = 2, 8, 4, 4
    H1 = W1 = 16                                   # x1 spatial; x2 is 2x
    x1 = jax.random.normal(k1, (N, Cin1, H1, W1), jnp.float32)
    x2 = jax.random.normal(k2, (N, Cskip, 2 * H1, 2 * W1), jnp.float32)

    Cc = Cin1 + Cskip                              # DoubleConv input channels
    Cmid = Cout                                    # mid_channels defaults to out
    # deterministic synthetic parameters (Conv2d has bias=False)
    w1 = 0.1 * jax.random.normal(k3, (3, 3, Cc, Cmid), jnp.float32)
    w2 = 0.1 * jax.random.normal(k4, (3, 3, Cmid, Cout), jnp.float32)
    g1 = 1.0 + 0.1 * jax.random.normal(k5, (Cmid,), jnp.float32)
    b1 = 0.1 * jax.random.normal(k6, (Cmid,), jnp.float32)
    g2 = 1.0 + 0.1 * jax.random.normal(k7, (Cout,), jnp.float32)
    b2 = 0.1 * jax.random.normal(k8, (Cout,), jnp.float32)

    # default (bf16 MXU operands, fp32 accumulation) and fp32 reference path
    up_bf16 = jax.jit(up_forward)
    up_f32 = jax.jit(functools.partial(up_forward, matmul_dtype=jnp.float32))

    out = jax.block_until_ready(up_bf16(x1, x2, w1, g1, b1, w2, g2, b2))
    out32 = jax.block_until_ready(up_f32(x1, x2, w1, g1, b1, w2, g2, b2))
    assert out.shape == (N, Cout, 2 * H1, 2 * W1), out.shape

    # cross-check the Pallas pipeline against a pure-JAX reference
    x1u = bilinear_upsample_2x_align_corners(x1)
    x_cat = jnp.concatenate([x2, x1u], axis=1)
    ref = _double_conv_ref(jnp.transpose(x_cat, (0, 2, 3, 1)),
                           w1, g1.reshape(1, 1, 1, -1), b1.reshape(1, 1, 1, -1),
                           w2, g2.reshape(1, 1, 1, -1), b2.reshape(1, 1, 1, -1))
    ref = jnp.transpose(ref, (0, 3, 1, 2))

    err32 = float(jnp.max(jnp.abs(out32 - ref)))           # structural check
    assert err32 < 2e-3, f"fp32 kernel/reference mismatch: {err32}"
    err16 = float(jnp.max(jnp.abs(out - ref)))              # bf16 operand path
    assert err16 < 8e-2, f"bf16 kernel/reference mismatch: {err16}"

    print("KERNEL_OK")
</pallas_src>

<mosaic_0001>
module attributes {stable_mosaic.version = 11 : i64} {
  func.func @_conv1_kernel(%arg0: i32, %arg1: memref<1x12x578xbf16, #tpu.memory_space<vmem>>, %arg2: memref<9x4x12xbf16, #tpu.memory_space<vmem>>, %arg3: memref<1x4x512xf32, #tpu.memory_space<vmem>>, %arg4: memref<1x4x2xf32, #tpu.memory_space<vmem>>) attributes {dimension_semantics = [#tpu.dimension_semantics<parallel>], iteration_bounds = array<i64: 4>, scalar_prefetch = 0 : i64, scratch_operands = 0 : i64, tpu.core_type = #tpu.core_type<tc>, window_params = [{transform_indices = @transform_0, window_bounds = array<i64: 1, 12, 578>}, {pipeline_mode = #tpu.pipeline_mode<synchronous>, transform_indices = @transform_1, window_bounds = array<i64: 9, 4, 12>}, {transform_indices = @transform_2, window_bounds = array<i64: 1, 4, 512>}, {transform_indices = @transform_3, window_bounds = array<i64: 1, 4, 2>}]} {
    %c0 = arith.constant 0 : index
    %c0_0 = arith.constant 0 : index
    %c0_1 = arith.constant 0 : index
    %0 = vector.load %arg1[%c0, %c0_0, %c0_1] : memref<1x12x578xbf16, #tpu.memory_space<vmem>>, vector<1x12x578xbf16>
    %1 = vector.shape_cast %0 : vector<1x12x578xbf16> to vector<12x578xbf16>
    %2 = tpu.iota {dimensions = array<i32: 1>} : vector<1x512xi32>
    %c32_i32 = arith.constant 32 : i32
    %c0_i32 = arith.constant 0 : i32
    %3 = arith.cmpi eq, %c32_i32, %c0_i32 : i32
    %c1_i32 = arith.constant 1 : i32
    %4 = arith.select %3, %c1_i32, %c32_i32 : i32
    %5 = vector.broadcast %4 : i32 to vector<1x512xi32>
    %6 = arith.remsi %2, %5 : vector<1x512xi32>
    %c0_i32_2 = arith.constant 0 : i32
    %7 = vector.broadcast %c0_i32_2 : i32 to vector<1x512xi32>
    %8 = arith.cmpi ne, %6, %7 : vector<1x512xi32>
    %c0_i32_3 = arith.constant 0 : i32
    %9 = vector.broadcast %c0_i32_3 : i32 to vector<1x512xi32>
    %10 = arith.cmpi slt, %6, %9 : vector<1x512xi32>
    %c0_i32_4 = arith.constant 0 : i32
    %11 = arith.cmpi slt, %4, %c0_i32_4 : i32
    %12 = vector.broadcast %11 : i1 to vector<1x512xi1>
    %13 = vector.broadcast %12 : vector<1x512xi1> to vector<1x512xi1>
    %14 = arith.xori %10, %13 : vector<1x512xi1>
    %15 = arith.andi %14, %8 : vector<1x512xi1>
    %16 = vector.broadcast %4 : i32 to vector<1x512xi32>
    %17 = arith.addi %6, %16 : vector<1x512xi32>
    %18 = arith.select %15, %17, %6 : vector<1x512xi1>, vector<1x512xi32>
    %c0_i32_5 = arith.constant 0 : i32
    %19 = vector.broadcast %c0_i32_5 : i32 to vector<1x512xi32>
    %20 = arith.cmpi ne, %18, %19 : vector<1x512xi32>
    %c31_i32 = arith.constant 31 : i32
    %21 = vector.broadcast %c31_i32 : i32 to vector<1x512xi32>
    %22 = arith.cmpi ne, %18, %21 : vector<1x512xi32>
    %cst = arith.constant 0.000000e+00 : f32
    %23 = vector.broadcast %cst : f32 to vector<4x512xf32>
    %24 = vector.extract_strided_slice %1 {offsets = [0, 0], sizes = [12, 512], strides = [1, 1]} : vector<12x578xbf16> to vector<12x512xbf16>
    %cst_6 = arith.constant 0.000000e+00 : bf16
    %25 = vector.shape_cast %20 : vector<1x512xi1> to vector<1x512xi1>
    %26 = vector.broadcast %25 : vector<1x512xi1> to vector<12x512xi1>
    %27 = vector.broadcast %cst_6 : bf16 to vector<12x512xbf16>
    %28 = arith.select %26, %24, %27 : vector<12x512xi1>, vector<12x512xbf16>
    %c0_7 = arith.constant 0 : index
    %c0_8 = arith.constant 0 : index
    %c0_9 = arith.constant 0 : index
    %29 = vector.load %arg2[%c0_7, %c0_8, %c0_9] : memref<9x4x12xbf16, #tpu.memory_space<vmem>>, vector<1x4x12xbf16>
    %30 = vector.shape_cast %29 : vector<1x4x12xbf16> to vector<4x12xbf16>
    %cst_10 = arith.constant dense<0.000000e+00> : vector<4x512xf32>
    %31 = tpu.matmul %30, %28, %cst_10 {dimension_numbers = #tpu.dot_dimension_numbers<[1], [0], [0], [1], [0, 0, 1, 1], [], []>} : vector<4x12xbf16>, vector<12x512xbf16>, vector<4x512xf32> -> vector<4x512xf32>
    %32 = arith.addf %23, %31 : vector<4x512xf32>
    %33 = vector.extract_strided_slice %1 {offsets = [0, 1], sizes = [12, 512], strides = [1, 1]} : vector<12x578xbf16> to vector<12x512xbf16>
    %c1 = arith.constant 1 : index
    %c0_11 = arith.constant 0 : index
    %c0_12 = arith.constant 0 : index
    %34 = vector.load %arg2[%c1, %c0_11, %c0_12] : memref<9x4x12xbf16, #tpu.memory_space<vmem>>, vector<1x4x12xbf16>
    %35 = vector.shape_cast %34 : vector<1x4x12xbf16> to vector<4x12xbf16>
    %cst_13 = arith.constant dense<0.000000e+00> : vector<4x512xf32>
    %36 = tpu.matmul %35, %33, %cst_13 {dimension_numbers = #tpu.dot_dimension_numbers<[1], [0], [0], [1], [0, 0, 1, 1], [], []>} : vector<4x12xbf16>, vector<12x512xbf16>, vector<4x512xf32> -> vector<4x512xf32>
    %37 = arith.addf %32, %36 : vector<4x512xf32>
    %38 = vector.extract_strided_slice %1 {offsets = [0, 2], sizes = [12, 512], strides = [1, 1]} : vector<12x578xbf16> to vector<12x512xbf16>
    %cst_14 = arith.constant 0.000000e+00 : bf16
    %39 = vector.shape_cast %22 : vector<1x512xi1> to vector<1x512xi1>
    %40 = vector.broadcast %39 : vector<1x512xi1> to vector<12x512xi1>
    %41 = vector.broadcast %cst_14 : bf16 to vector<12x512xbf16>
    %42 = arith.select %40, %38, %41 : vector<12x512xi1>, vector<12x512xbf16>
    %c2 = arith.constant 2 : index
    %c0_15 = arith.constant 0 : index
    %c0_16 = arith.constant 0 : index
    %43 = vector.load %arg2[%c2, %c0_15, %c0_16] : memref<9x4x12xbf16, #tpu.memory_space<vmem>>, vector<1x4x12xbf16>
    %44 = vector.shape_cast %43 : vector<1x4x12xbf16> to vector<4x12xbf16>
    %cst_17 = arith.constant dense<0.000000e+00> : vector<4x512xf32>
    %45 = tpu.matmul %44, %42, %cst_17 {dimension_numbers = #tpu.dot_dimension_numbers<[1], [0], [0], [1], [0, 0, 1, 1], [], []>} : vector<4x12xbf16>, vector<12x512xbf16>, vector<4x512xf32> -> vector<4x512xf32>
    %46 = arith.addf %37, %45 : vector<4x512xf32>
    %47 = vector.extract_strided_slice %1 {offsets = [0, 32], sizes = [12, 512], strides = [1, 1]} : vector<12x578xbf16> to vector<12x512xbf16>
    %cst_18 = arith.constant 0.000000e+00 : bf16
    %48 = vector.shape_cast %20 : vector<1x512xi1> to vector<1x512xi1>
    %49 = vector.broadcast %48 : vector<1x512xi1> to vector<12x512xi1>
    %50 = vector.broadcast %cst_18 : bf16 to vector<12x512xbf16>
    %51 = arith.select %49, %47, %50 : vector<12x512xi1>, vector<12x512xbf16>
    %c3 = arith.constant 3 : index
    %c0_19 = arith.constant 0 : index
    %c0_20 = arith.constant 0 : index
    %52 = vector.load %arg2[%c3, %c0_19, %c0_20] : memref<9x4x12xbf16, #tpu.memory_space<vmem>>, vector<1x4x12xbf16>
    %53 = vector.shape_cast %52 : vector<1x4x12xbf16> to vector<4x12xbf16>
    %cst_21 = arith.constant dense<0.000000e+00> : vector<4x512xf32>
    %54 = tpu.matmul %53, %51, %cst_21 {dimension_numbers = #tpu.dot_dimension_numbers<[1], [0], [0], [1], [0, 0, 1, 1], [], []>} : vector<4x12xbf16>, vector<12x512xbf16>, vector<4x512xf32> -> vector<4x512xf32>
    %55 = arith.addf %46, %54 : vector<4x512xf32>
    %56 = vector.extract_strided_slice %1 {offsets = [0, 33], sizes = [12, 512], strides = [1, 1]} : vector<12x578xbf16> to vector<12x512xbf16>
    %c4 = arith.constant 4 : index
    %c0_22 = arith.constant 0 : index
    %c0_23 = arith.constant 0 : index
    %57 = vector.load %arg2[%c4, %c0_22, %c0_23] : memref<9x4x12xbf16, #tpu.memory_space<vmem>>, vector<1x4x12xbf16>
    %58 = vector.shape_cast %57 : vector<1x4x12xbf16> to vector<4x12xbf16>
    %cst_24 = arith.constant dense<0.000000e+00> : vector<4x512xf32>
    %59 = tpu.matmul %58, %56, %cst_24 {dimension_numbers = #tpu.dot_dimension_numbers<[1], [0], [0], [1], [0, 0, 1, 1], [], []>} : vector<4x12xbf16>, vector<12x512xbf16>, vector<4x512xf32> -> vector<4x512xf32>
    %60 = arith.addf %55, %59 : vector<4x512xf32>
    %61 = vector.extract_strided_slice %1 {offsets = [0, 34], sizes = [12, 512], strides = [1, 1]} : vector<12x578xbf16> to vector<12x512xbf16>
    %cst_25 = arith.constant 0.000000e+00 : bf16
    %62 = vector.shape_cast %22 : vector<1x512xi1> to vector<1x512xi1>
    %63 = vector.broadcast %62 : vector<1x512xi1> to vector<12x512xi1>
    %64 = vector.broadcast %cst_25 : bf16 to vector<12x512xbf16>
    %65 = arith.select %63, %61, %64 : vector<12x512xi1>, vector<12x512xbf16>
    %c5 = arith.constant 5 : index
    %c0_26 = arith.constant 0 : index
    %c0_27 = arith.constant 0 : index
    %66 = vector.load %arg2[%c5, %c0_26, %c0_27] : memref<9x4x12xbf16, #tpu.memory_space<vmem>>, vector<1x4x12xbf16>
    %67 = vector.shape_cast %66 : vector<1x4x12xbf16> to vector<4x12xbf16>
    %cst_28 = arith.constant dense<0.000000e+00> : vector<4x512xf32>
    %68 = tpu.matmul %67, %65, %cst_28 {dimension_numbers = #tpu.dot_dimension_numbers<[1], [0], [0], [1], [0, 0, 1, 1], [], []>} : vector<4x12xbf16>, vector<12x512xbf16>, vector<4x512xf32> -> vector<4x512xf32>
    %69 = arith.addf %60, %68 : vector<4x512xf32>
    %70 = vector.extract_strided_slice %1 {offsets = [0, 64], sizes = [12, 512], strides = [1, 1]} : vector<12x578xbf16> to vector<12x512xbf16>
    %cst_29 = arith.constant 0.000000e+00 : bf16
    %71 = vector.shape_cast %20 : vector<1x512xi1> to vector<1x512xi1>
    %72 = vector.broadcast %71 : vector<1x512xi1> to vector<12x512xi1>
    %73 = vector.broadcast %cst_29 : bf16 to vector<12x512xbf16>
    %74 = arith.select %72, %70, %73 : vector<12x512xi1>, vector<12x512xbf16>
    %c6 = arith.constant 6 : index
    %c0_30 = arith.constant 0 : index
    %c0_31 = arith.constant 0 : index
    %75 = vector.load %arg2[%c6, %c0_30, %c0_31] : memref<9x4x12xbf16, #tpu.memory_space<vmem>>, vector<1x4x12xbf16>
    %76 = vector.shape_cast %75 : vector<1x4x12xbf16> to vector<4x12xbf16>
    %cst_32 = arith.constant dense<0.000000e+00> : vector<4x512xf32>
    %77 = tpu.matmul %76, %74, %cst_32 {dimension_numbers = #tpu.dot_dimension_numbers<[1], [0], [0], [1], [0, 0, 1, 1], [], []>} : vector<4x12xbf16>, vector<12x512xbf16>, vector<4x512xf32> -> vector<4x512xf32>
    %78 = arith.addf %69, %77 : vector<4x512xf32>
    %79 = vector.extract_strided_slice %1 {offsets = [0, 65], sizes = [12, 512], strides = [1, 1]} : vector<12x578xbf16> to vector<12x512xbf16>
    %c7 = arith.constant 7 : index
    %c0_33 = arith.constant 0 : index
    %c0_34 = arith.constant 0 : index
    %80 = vector.load %arg2[%c7, %c0_33, %c0_34] : memref<9x4x12xbf16, #tpu.memory_space<vmem>>, vector<1x4x12xbf16>
    %81 = vector.shape_cast %80 : vector<1x4x12xbf16> to vector<4x12xbf16>
    %cst_35 = arith.constant dense<0.000000e+00> : vector<4x512xf32>
    %82 = tpu.matmul %81, %79, %cst_35 {dimension_numbers = #tpu.dot_dimension_numbers<[1], [0], [0], [1], [0, 0, 1, 1], [], []>} : vector<4x12xbf16>, vector<12x512xbf16>, vector<4x512xf32> -> vector<4x512xf32>
    %83 = arith.addf %78, %82 : vector<4x512xf32>
    %84 = vector.extract_strided_slice %1 {offsets = [0, 66], sizes = [12, 512], strides = [1, 1]} : vector<12x578xbf16> to vector<12x512xbf16>
    %cst_36 = arith.constant 0.000000e+00 : bf16
    %85 = vector.shape_cast %22 : vector<1x512xi1> to vector<1x512xi1>
    %86 = vector.broadcast %85 : vector<1x512xi1> to vector<12x512xi1>
    %87 = vector.broadcast %cst_36 : bf16 to vector<12x512xbf16>
    %88 = arith.select %86, %84, %87 : vector<12x512xi1>, vector<12x512xbf16>
    %c8 = arith.constant 8 : index
    %c0_37 = arith.constant 0 : index
    %c0_38 = arith.constant 0 : index
    %89 = vector.load %arg2[%c8, %c0_37, %c0_38] : memref<9x4x12xbf16, #tpu.memory_space<vmem>>, vector<1x4x12xbf16>
    %90 = vector.shape_cast %89 : vector<1x4x12xbf16> to vector<4x12xbf16>
    %cst_39 = arith.constant dense<0.000000e+00> : vector<4x512xf32>
    %91 = tpu.matmul %90, %88, %cst_39 {dimension_numbers = #tpu.dot_dimension_numbers<[1], [0], [0], [1], [0, 0, 1, 1], [], []>} : vector<4x12xbf16>, vector<12x512xbf16>, vector<4x512xf32> -> vector<4x512xf32>
    %92 = arith.addf %83, %91 : vector<4x512xf32>
    %c0_40 = arith.constant 0 : index
    %c0_41 = arith.constant 0 : index
    %c0_42 = arith.constant 0 : index
    %93 = vector.load %arg3[%c0_40, %c0_41, %c0_42] : memref<1x4x512xf32, #tpu.memory_space<vmem>>, vector<1x4x512xf32>
    %94 = vector.shape_cast %93 : vector<1x4x512xf32> to vector<4x512xf32>
    %95 = vector.shape_cast %92 : vector<4x512xf32> to vector<1x4x512xf32>
    tpu.vector_store %arg3[%c0_40, %c0_41, %c0_42], %95 {strides = array<i32>} : memref<1x4x512xf32, #tpu.memory_space<vmem>>, vector<1x4x512xf32>,
    %cst_43 = arith.constant dense<0.000000e+00> : vector<4xf32>
    %96 = vector.multi_reduction <add>, %92, %cst_43 [1] : vector<4x512xf32> to vector<4xf32>
    %97 = vector.shape_cast %96 : vector<4xf32> to vector<4x1xf32>
    %98 = arith.mulf %92, %92 : vector<4x512xf32>
    %cst_44 = arith.constant dense<0.000000e+00> : vector<4xf32>
    %99 = vector.multi_reduction <add>, %98, %cst_44 [1] : vector<4x512xf32> to vector<4xf32>
    %100 = vector.shape_cast %99 : vector<4xf32> to vector<4x1xf32>
    %101 = tpu.concatenate %97, %100 in 1 : vector<4x1xf32>, vector<4x1xf32> -> vector<4x2xf32>
    %c0_45 = arith.constant 0 : index
    %c0_46 = arith.constant 0 : index
    %c0_47 = arith.constant 0 : index
    %102 = vector.load %arg4[%c0_45, %c0_46, %c0_47] : memref<1x4x2xf32, #tpu.memory_space<vmem>>, vector<1x4x2xf32>
    %103 = vector.shape_cast %102 : vector<1x4x2xf32> to vector<4x2xf32>
    %104 = vector.shape_cast %101 : vector<4x2xf32> to vector<1x4x2xf32>
    tpu.vector_store %arg4[%c0_45, %c0_46, %c0_47], %104 {strides = array<i32>} : memref<1x4x2xf32, #tpu.memory_space<vmem>>, vector<1x4x2xf32>,
    return
  }
  func.func @transform_0(%arg0: i32) -> (i32, i32, i32) {
    %c0_i32 = arith.constant 0 : i32
    %c0_i32_0 = arith.constant 0 : i32
    %c0_i32_1 = arith.constant 0 : i32
    return %arg0, %c0_i32, %c0_i32_0 : i32, i32, i32
  }
  func.func @transform_1(%arg0: i32) -> (i32, i32, i32) {
    %c0_i32 = arith.constant 0 : i32
    %c0_i32_0 = arith.constant 0 : i32
    %c0_i32_1 = arith.constant 0 : i32
    %c0_i32_2 = arith.constant 0 : i32
    return %c0_i32, %c0_i32_0, %c0_i32_1 : i32, i32, i32
  }
  func.func @transform_2(%arg0: i32) -> (i32, i32, i32) {
    %c0_i32 = arith.constant 0 : i32
    %c0_i32_0 = arith.constant 0 : i32
    %c0_i32_1 = arith.constant 0 : i32
    return %arg0, %c0_i32, %c0_i32_0 : i32, i32, i32
  }
  func.func @transform_3(%arg0: i32) -> (i32, i32, i32) {
    %c0_i32 = arith.constant 0 : i32
    %c0_i32_0 = arith.constant 0 : i32
    %c0_i32_1 = arith.constant 0 : i32
    return %arg0, %c0_i32, %c0_i32_0 : i32, i32, i32
  }
}

module attributes {stable_mosaic.version = 11 : i64} {
  func.func @_bnrelu_conv2_kernel(%arg0: i32, %arg1: memref<1x4x578xf32, #tpu.memory_space<vmem>>, %arg2: memref<4x2xf32, #tpu.memory_space<vmem>>, %arg3: memref<9x4x4xbf16, #tpu.memory_space<vmem>>, %arg4: memref<1x4x512xf32, #tpu.memory_space<vmem>>, %arg5: memref<1x4x2xf32, #tpu.memory_space<vmem>>) attributes {dimension_semantics = [#tpu.dimension_semantics<parallel>], iteration_bounds = array<i64: 4>, scalar_prefetch = 0 : i64, scratch_operands = 0 : i64, tpu.core_type = #tpu.core_type<tc>, window_params = [{transform_indices = @transform_0, window_bounds = array<i64: 1, 4, 578>}, {pipeline_mode = #tpu.pipeline_mode<synchronous>, transform_indices = @transform_1, window_bounds = array<i64: 4, 2>}, {pipeline_mode = #tpu.pipeline_mode<synchronous>, transform_indices = @transform_2, window_bounds = array<i64: 9, 4, 4>}, {transform_indices = @transform_3, window_bounds = array<i64: 1, 4, 512>}, {transform_indices = @transform_4, window_bounds = array<i64: 1, 4, 2>}]} {
    %c2_i32 = arith.constant 2 : i32
    %c0_i32 = arith.constant 0 : i32
    %0 = arith.cmpi eq, %c2_i32, %c0_i32 : i32
    %c1_i32 = arith.constant 1 : i32
    %1 = arith.select %0, %c1_i32, %c2_i32 : i32
    %2 = arith.remsi %arg0, %1 : i32
    %c0_i32_0 = arith.constant 0 : i32
    %3 = arith.cmpi ne, %2, %c0_i32_0 : i32
    %c0_i32_1 = arith.constant 0 : i32
    %4 = arith.cmpi slt, %2, %c0_i32_1 : i32
    %c0_i32_2 = arith.constant 0 : i32
    %5 = arith.cmpi slt, %1, %c0_i32_2 : i32
    %6 = arith.xori %4, %5 : i1
    %7 = arith.andi %6, %3 : i1
    %8 = arith.addi %2, %1 : i32
    %9 = arith.select %7, %8, %2 : i32
    %c0 = arith.constant 0 : index
    %c0_3 = arith.constant 0 : index
    %10 = vector.load %arg2[%c0, %c0_3] : memref<4x2xf32, #tpu.memory_space<vmem>>, vector<4x1xf32>
    %c0_4 = arith.constant 0 : index
    %c1 = arith.constant 1 : index
    %11 = vector.load %arg2[%c0_4, %c1] : memref<4x2xf32, #tpu.memory_space<vmem>>, vector<4x1xf32>
    %c0_5 = arith.constant 0 : index
    %c0_6 = arith.constant 0 : index
    %c0_7 = arith.constant 0 : index
    %12 = vector.load %arg1[%c0_5, %c0_6, %c0_7] : memref<1x4x578xf32, #tpu.memory_space<vmem>>, vector<1x4x578xf32>
    %13 = vector.shape_cast %12 : vector<1x4x578xf32> to vector<4x578xf32>
    %14 = vector.broadcast %10 : vector<4x1xf32> to vector<4x578xf32>
    %15 = arith.mulf %13, %14 : vector<4x578xf32>
    %16 = vector.broadcast %11 : vector<4x1xf32> to vector<4x578xf32>
    %17 = arith.addf %15, %16 : vector<4x578xf32>
    %cst = arith.constant 0.000000e+00 : f32
    %18 = vector.broadcast %cst : f32 to vector<4x578xf32>
    %19 = arith.maximumf %17, %18 : vector<4x578xf32>
    %20 = tpu.iota {dimensions = array<i32: 1>} : vector<1x578xi32>
    %c33_i32 = arith.constant 33 : i32
    %21 = vector.broadcast %c33_i32 : i32 to vector<1x578xi32>
    %22 = arith.cmpi slt, %20, %21 : vector<1x578xi32>
    %c0_i32_8 = arith.constant 0 : i32
    %23 = arith.cmpi eq, %9, %c0_i32_8 : i32
    %24 = vector.broadcast %23 : i1 to vector<1x578xi1>
    %25 = arith.andi %22, %24 : vector<1x578xi1>
    %c545_i32 = arith.constant 545 : i32
    %26 = vector.broadcast %c545_i32 : i32 to vector<1x578xi32>
    %27 = arith.cmpi sge, %20, %26 : vector<1x578xi32>
    %c1_i32_9 = arith.constant 1 : i32
    %28 = arith.cmpi eq, %9, %c1_i32_9 : i32
    %29 = vector.broadcast %28 : i1 to vector<1x578xi1>
    %30 = arith.andi %27, %29 : vector<1x578xi1>
    %31 = arith.ori %25, %30 : vector<1x578xi1>
    %cst_10 = arith.constant 0.000000e+00 : f32
    %32 = vector.shape_cast %31 : vector<1x578xi1> to vector<1x578xi1>
    %33 = vector.broadcast %32 : vector<1x578xi1> to vector<4x578xi1>
    %34 = vector.broadcast %cst_10 : f32 to vector<4x578xf32>
    %35 = arith.select %33, %34, %19 : vector<4x578xi1>, vector<4x578xf32>
    %36 = arith.truncf %35 : vector<4x578xf32> to vector<4x578xbf16>
    %37 = tpu.iota {dimensions = array<i32: 1>} : vector<1x512xi32>
    %c32_i32 = arith.constant 32 : i32
    %c0_i32_11 = arith.constant 0 : i32
    %38 = arith.cmpi eq, %c32_i32, %c0_i32_11 : i32
    %c1_i32_12 = arith.constant 1 : i32
    %39 = arith.select %38, %c1_i32_12, %c32_i32 : i32
    %40 = vector.broadcast %39 : i32 to vector<1x512xi32>
    %41 = arith.remsi %37, %40 : vector<1x512xi32>
    %c0_i32_13 = arith.constant 0 : i32
    %42 = vector.broadcast %c0_i32_13 : i32 to vector<1x512xi32>
    %43 = arith.cmpi ne, %41, %42 : vector<1x512xi32>
    %c0_i32_14 = arith.constant 0 : i32
    %44 = vector.broadcast %c0_i32_14 : i32 to vector<1x512xi32>
    %45 = arith.cmpi slt, %41, %44 : vector<1x512xi32>
    %c0_i32_15 = arith.constant 0 : i32
    %46 = arith.cmpi slt, %39, %c0_i32_15 : i32
    %47 = vector.broadcast %46 : i1 to vector<1x512xi1>
    %48 = vector.broadcast %47 : vector<1x512xi1> to vector<1x512xi1>
    %49 = arith.xori %45, %48 : vector<1x512xi1>
    %50 = arith.andi %49, %43 : vector<1x512xi1>
    %51 = vector.broadcast %39 : i32 to vector<1x512xi32>
    %52 = arith.addi %41, %51 : vector<1x512xi32>
    %53 = arith.select %50, %52, %41 : vector<1x512xi1>, vector<1x512xi32>
    %c0_i32_16 = arith.constant 0 : i32
    %54 = vector.broadcast %c0_i32_16 : i32 to vector<1x512xi32>
    %55 = arith.cmpi ne, %53, %54 : vector<1x512xi32>
    %c31_i32 = arith.constant 31 : i32
    %56 = vector.broadcast %c31_i32 : i32 to vector<1x512xi32>
    %57 = arith.cmpi ne, %53, %56 : vector<1x512xi32>
    %cst_17 = arith.constant 0.000000e+00 : f32
    %58 = vector.broadcast %cst_17 : f32 to vector<4x512xf32>
    %59 = vector.extract_strided_slice %36 {offsets = [0, 0], sizes = [4, 512], strides = [1, 1]} : vector<4x578xbf16> to vector<4x512xbf16>
    %cst_18 = arith.constant 0.000000e+00 : bf16
    %60 = vector.shape_cast %55 : vector<1x512xi1> to vector<1x512xi1>
    %61 = vector.broadcast %60 : vector<1x512xi1> to vector<4x512xi1>
    %62 = vector.broadcast %cst_18 : bf16 to vector<4x512xbf16>
    %63 = arith.select %61, %59, %62 : vector<4x512xi1>, vector<4x512xbf16>
    %c0_19 = arith.constant 0 : index
    %c0_20 = arith.constant 0 : index
    %c0_21 = arith.constant 0 : index
    %64 = vector.load %arg3[%c0_19, %c0_20, %c0_21] : memref<9x4x4xbf16, #tpu.memory_space<vmem>>, vector<1x4x4xbf16>
    %65 = vector.shape_cast %64 : vector<1x4x4xbf16> to vector<4x4xbf16>
    %cst_22 = arith.constant dense<0.000000e+00> : vector<4x512xf32>
    %66 = tpu.matmul %65, %63, %cst_22 {dimension_numbers = #tpu.dot_dimension_numbers<[1], [0], [0], [1], [0, 0, 1, 1], [], []>} : vector<4x4xbf16>, vector<4x512xbf16>, vector<4x512xf32> -> vector<4x512xf32>
    %67 = arith.addf %58, %66 : vector<4x512xf32>
    %68 = vector.extract_strided_slice %36 {offsets = [0, 1], sizes = [4, 512], strides = [1, 1]} : vector<4x578xbf16> to vector<4x512xbf16>
    %c1_23 = arith.constant 1 : index
    %c0_24 = arith.constant 0 : index
    %c0_25 = arith.constant 0 : index
    %69 = vector.load %arg3[%c1_23, %c0_24, %c0_25] : memref<9x4x4xbf16, #tpu.memory_space<vmem>>, vector<1x4x4xbf16>
    %70 = vector.shape_cast %69 : vector<1x4x4xbf16> to vector<4x4xbf16>
    %cst_26 = arith.constant dense<0.000000e+00> : vector<4x512xf32>
    %71 = tpu.matmul %70, %68, %cst_26 {dimension_numbers = #tpu.dot_dimension_numbers<[1], [0], [0], [1], [0, 0, 1, 1], [], []>} : vector<4x4xbf16>, vector<4x512xbf16>, vector<4x512xf32> -> vector<4x512xf32>
    %72 = arith.addf %67, %71 : vector<4x512xf32>
    %73 = vector.extract_strided_slice %36 {offsets = [0, 2], sizes = [4, 512], strides = [1, 1]} : vector<4x578xbf16> to vector<4x512xbf16>
    %cst_27 = arith.constant 0.000000e+00 : bf16
    %74 = vector.shape_cast %57 : vector<1x512xi1> to vector<1x512xi1>
    %75 = vector.broadcast %74 : vector<1x512xi1> to vector<4x512xi1>
    %76 = vector.broadcast %cst_27 : bf16 to vector<4x512xbf16>
    %77 = arith.select %75, %73, %76 : vector<4x512xi1>, vector<4x512xbf16>
    %c2 = arith.constant 2 : index
    %c0_28 = arith.constant 0 : index
    %c0_29 = arith.constant 0 : index
    %78 = vector.load %arg3[%c2, %c0_28, %c0_29] : memref<9x4x4xbf16, #tpu.memory_space<vmem>>, vector<1x4x4xbf16>
    %79 = vector.shape_cast %78 : vector<1x4x4xbf16> to vector<4x4xbf16>
    %cst_30 = arith.constant dense<0.000000e+00> : vector<4x512xf32>
    %80 = tpu.matmul %79, %77, %cst_30 {dimension_numbers = #tpu.dot_dimension_numbers<[1], [0], [0], [1], [0, 0, 1, 1], [], []>} : vector<4x4xbf16>, vector<4x512xbf16>, vector<4x512xf32> -> vector<4x512xf32>
    %81 = arith.addf %72, %80 : vector<4x512xf32>
    %82 = vector.extract_strided_slice %36 {offsets = [0, 32], sizes = [4, 512], strides = [1, 1]} : vector<4x578xbf16> to vector<4x512xbf16>
    %cst_31 = arith.constant 0.000000e+00 : bf16
    %83 = vector.shape_cast %55 : vector<1x512xi1> to vector<1x512xi1>
    %84 = vector.broadcast %83 : vector<1x512xi1> to vector<4x512xi1>
    %85 = vector.broadcast %cst_31 : bf16 to vector<4x512xbf16>
    %86 = arith.select %84, %82, %85 : vector<4x512xi1>, vector<4x512xbf16>
    %c3 = arith.constant 3 : index
    %c0_32 = arith.constant 0 : index
    %c0_33 = arith.constant 0 : index
    %87 = vector.load %arg3[%c3, %c0_32, %c0_33] : memref<9x4x4xbf16, #tpu.memory_space<vmem>>, vector<1x4x4xbf16>
    %88 = vector.shape_cast %87 : vector<1x4x4xbf16> to vector<4x4xbf16>
    %cst_34 = arith.constant dense<0.000000e+00> : vector<4x512xf32>
    %89 = tpu.matmul %88, %86, %cst_34 {dimension_numbers = #tpu.dot_dimension_numbers<[1], [0], [0], [1], [0, 0, 1, 1], [], []>} : vector<4x4xbf16>, vector<4x512xbf16>, vector<4x512xf32> -> vector<4x512xf32>
    %90 = arith.addf %81, %89 : vector<4x512xf32>
    %91 = vector.extract_strided_slice %36 {offsets = [0, 33], sizes = [4, 512], strides = [1, 1]} : vector<4x578xbf16> to vector<4x512xbf16>
    %c4 = arith.constant 4 : index
    %c0_35 = arith.constant 0 : index
    %c0_36 = arith.constant 0 : index
    %92 = vector.load %arg3[%c4, %c0_35, %c0_36] : memref<9x4x4xbf16, #tpu.memory_space<vmem>>, vector<1x4x4xbf16>
    %93 = vector.shape_cast %92 : vector<1x4x4xbf16> to vector<4x4xbf16>
    %cst_37 = arith.constant dense<0.000000e+00> : vector<4x512xf32>
    %94 = tpu.matmul %93, %91, %cst_37 {dimension_numbers = #tpu.dot_dimension_numbers<[1], [0], [0], [1], [0, 0, 1, 1], [], []>} : vector<4x4xbf16>, vector<4x512xbf16>, vector<4x512xf32> -> vector<4x512xf32>
    %95 = arith.addf %90, %94 : vector<4x512xf32>
    %96 = vector.extract_strided_slice %36 {offsets = [0, 34], sizes = [4, 512], strides = [1, 1]} : vector<4x578xbf16> to vector<4x512xbf16>
    %cst_38 = arith.constant 0.000000e+00 : bf16
    %97 = vector.shape_cast %57 : vector<1x512xi1> to vector<1x512xi1>
    %98 = vector.broadcast %97 : vector<1x512xi1> to vector<4x512xi1>
    %99 = vector.broadcast %cst_38 : bf16 to vector<4x512xbf16>
    %100 = arith.select %98, %96, %99 : vector<4x512xi1>, vector<4x512xbf16>
    %c5 = arith.constant 5 : index
    %c0_39 = arith.constant 0 : index
    %c0_40 = arith.constant 0 : index
    %101 = vector.load %arg3[%c5, %c0_39, %c0_40] : memref<9x4x4xbf16, #tpu.memory_space<vmem>>, vector<1x4x4xbf16>
    %102 = vector.shape_cast %101 : vector<1x4x4xbf16> to vector<4x4xbf16>
    %cst_41 = arith.constant dense<0.000000e+00> : vector<4x512xf32>
    %103 = tpu.matmul %102, %100, %cst_41 {dimension_numbers = #tpu.dot_dimension_numbers<[1], [0], [0], [1], [0, 0, 1, 1], [], []>} : vector<4x4xbf16>, vector<4x512xbf16>, vector<4x512xf32> -> vector<4x512xf32>
    %104 = arith.addf %95, %103 : vector<4x512xf32>
    %105 = vector.extract_strided_slice %36 {offsets = [0, 64], sizes = [4, 512], strides = [1, 1]} : vector<4x578xbf16> to vector<4x512xbf16>
    %cst_42 = arith.constant 0.000000e+00 : bf16
    %106 = vector.shape_cast %55 : vector<1x512xi1> to vector<1x512xi1>
    %107 = vector.broadcast %106 : vector<1x512xi1> to vector<4x512xi1>
    %108 = vector.broadcast %cst_42 : bf16 to vector<4x512xbf16>
    %109 = arith.select %107, %105, %108 : vector<4x512xi1>, vector<4x512xbf16>
    %c6 = arith.constant 6 : index
    %c0_43 = arith.constant 0 : index
    %c0_44 = arith.constant 0 : index
    %110 = vector.load %arg3[%c6, %c0_43, %c0_44] : memref<9x4x4xbf16, #tpu.memory_space<vmem>>, vector<1x4x4xbf16>
    %111 = vector.shape_cast %110 : vector<1x4x4xbf16> to vector<4x4xbf16>
    %cst_45 = arith.constant dense<0.000000e+00> : vector<4x512xf32>
    %112 = tpu.matmul %111, %109, %cst_45 {dimension_numbers = #tpu.dot_dimension_numbers<[1], [0], [0], [1], [0, 0, 1, 1], [], []>} : vector<4x4xbf16>, vector<4x512xbf16>, vector<4x512xf32> -> vector<4x512xf32>
    %113 = arith.addf %104, %112 : vector<4x512xf32>
    %114 = vector.extract_strided_slice %36 {offsets = [0, 65], sizes = [4, 512], strides = [1, 1]} : vector<4x578xbf16> to vector<4x512xbf16>
    %c7 = arith.constant 7 : index
    %c0_46 = arith.constant 0 : index
    %c0_47 = arith.constant 0 : index
    %115 = vector.load %arg3[%c7, %c0_46, %c0_47] : memref<9x4x4xbf16, #tpu.memory_space<vmem>>, vector<1x4x4xbf16>
    %116 = vector.shape_cast %115 : vector<1x4x4xbf16> to vector<4x4xbf16>
    %cst_48 = arith.constant dense<0.000000e+00> : vector<4x512xf32>
    %117 = tpu.matmul %116, %114, %cst_48 {dimension_numbers = #tpu.dot_dimension_numbers<[1], [0], [0], [1], [0, 0, 1, 1], [], []>} : vector<4x4xbf16>, vector<4x512xbf16>, vector<4x512xf32> -> vector<4x512xf32>
    %118 = arith.addf %113, %117 : vector<4x512xf32>
    %119 = vector.extract_strided_slice %36 {offsets = [0, 66], sizes = [4, 512], strides = [1, 1]} : vector<4x578xbf16> to vector<4x512xbf16>
    %cst_49 = arith.constant 0.000000e+00 : bf16
    %120 = vector.shape_cast %57 : vector<1x512xi1> to vector<1x512xi1>
    %121 = vector.broadcast %120 : vector<1x512xi1> to vector<4x512xi1>
    %122 = vector.broadcast %cst_49 : bf16 to vector<4x512xbf16>
    %123 = arith.select %121, %119, %122 : vector<4x512xi1>, vector<4x512xbf16>
    %c8 = arith.constant 8 : index
    %c0_50 = arith.constant 0 : index
    %c0_51 = arith.constant 0 : index
    %124 = vector.load %arg3[%c8, %c0_50, %c0_51] : memref<9x4x4xbf16, #tpu.memory_space<vmem>>, vector<1x4x4xbf16>
    %125 = vector.shape_cast %124 : vector<1x4x4xbf16> to vector<4x4xbf16>
    %cst_52 = arith.constant dense<0.000000e+00> : vector<4x512xf32>
    %126 = tpu.matmul %125, %123, %cst_52 {dimension_numbers = #tpu.dot_dimension_numbers<[1], [0], [0], [1], [0, 0, 1, 1], [], []>} : vector<4x4xbf16>, vector<4x512xbf16>, vector<4x512xf32> -> vector<4x512xf32>
    %127 = arith.addf %118, %126 : vector<4x512xf32>
    %c0_53 = arith.constant 0 : index
    %c0_54 = arith.constant 0 : index
    %c0_55 = arith.constant 0 : index
    %128 = vector.load %arg4[%c0_53, %c0_54, %c0_55] : memref<1x4x512xf32, #tpu.memory_space<vmem>>, vector<1x4x512xf32>
    %129 = vector.shape_cast %128 : vector<1x4x512xf32> to vector<4x512xf32>
    %130 = vector.shape_cast %127 : vector<4x512xf32> to vector<1x4x512xf32>
    tpu.vector_store %arg4[%c0_53, %c0_54, %c0_55], %130 {strides = array<i32>} : memref<1x4x512xf32, #tpu.memory_space<vmem>>, vector<1x4x512xf32>,
    %cst_56 = arith.constant dense<0.000000e+00> : vector<4xf32>
    %131 = vector.multi_reduction <add>, %127, %cst_56 [1] : vector<4x512xf32> to vector<4xf32>
    %132 = vector.shape_cast %131 : vector<4xf32> to vector<4x1xf32>
    %133 = arith.mulf %127, %127 : vector<4x512xf32>
    %cst_57 = arith.constant dense<0.000000e+00> : vector<4xf32>
    %134 = vector.multi_reduction <add>, %133, %cst_57 [1] : vector<4x512xf32> to vector<4xf32>
    %135 = vector.shape_cast %134 : vector<4xf32> to vector<4x1xf32>
    %136 = tpu.concatenate %132, %135 in 1 : vector<4x1xf32>, vector<4x1xf32> -> vector<4x2xf32>
    %c0_58 = arith.constant 0 : index
    %c0_59 = arith.constant 0 : index
    %c0_60 = arith.constant 0 : index
    %137 = vector.load %arg5[%c0_58, %c0_59, %c0_60] : memref<1x4x2xf32, #tpu.memory_space<vmem>>, vector<1x4x2xf32>
    %138 = vector.shape_cast %137 : vector<1x4x2xf32> to vector<4x2xf32>
    %139 = vector.shape_cast %136 : vector<4x2xf32> to vector<1x4x2xf32>
    tpu.vector_store %arg5[%c0_58, %c0_59, %c0_60], %139 {strides = array<i32>} : memref<1x4x2xf32, #tpu.memory_space<vmem>>, vector<1x4x2xf32>,
    return
  }
  func.func @transform_0(%arg0: i32) -> (i32, i32, i32) {
    %c0_i32 = arith.constant 0 : i32
    %c0_i32_0 = arith.constant 0 : i32
    %c0_i32_1 = arith.constant 0 : i32
    return %arg0, %c0_i32, %c0_i32_0 : i32, i32, i32
  }
  func.func @transform_1(%arg0: i32) -> (i32, i32) {
    %c0_i32 = arith.constant 0 : i32
    %c0_i32_0 = arith.constant 0 : i32
    %c0_i32_1 = arith.constant 0 : i32
    return %c0_i32, %c0_i32_0 : i32, i32
  }
  func.func @transform_2(%arg0: i32) -> (i32, i32, i32) {
    %c0_i32 = arith.constant 0 : i32
    %c0_i32_0 = arith.constant 0 : i32
    %c0_i32_1 = arith.constant 0 : i32
    %c0_i32_2 = arith.constant 0 : i32
    return %c0_i32, %c0_i32_0, %c0_i32_1 : i32, i32, i32
  }
  func.func @transform_3(%arg0: i32) -> (i32, i32, i32) {
    %c0_i32 = arith.constant 0 : i32
    %c0_i32_0 = arith.constant 0 : i32
    %c0_i32_1 = arith.constant 0 : i32
    return %arg0, %c0_i32, %c0_i32_0 : i32, i32, i32
  }
  func.func @transform_4(%arg0: i32) -> (i32, i32, i32) {
    %c0_i32 = arith.constant 0 : i32
    %c0_i32_0 = arith.constant 0 : i32
    %c0_i32_1 = arith.constant 0 : i32
    return %arg0, %c0_i32, %c0_i32_0 : i32, i32, i32
  }
}

</mosaic_0001>

<bundles_post_ra>
// kernel: up_forward.2
= control target key start
LH: loop header
LB: loop body
LE: loop exit
PB: predicated region body
PF: predicated region fallthrough
CT: control target
= control target key end

     0   :  { %s1838_s12 = smov 0   ;;  %s2190_s0 = inlined_call_operand.vmem [shape: bf16[4,12,578], index: 0, kind: input, shape index: {}]   ;;  %s2191_s1 = inlined_call_operand.vmem [shape: bf16[9,4,12], index: 1, kind: input, shape index: {}]   ;;  %s2192_s2 = inlined_call_operand.vmem [shape: f32[4,4,512], index: 2, kind: output, shape index: {0}]   ;;  %s2193_s3 = inlined_call_operand.vmem [shape: f32[4,4,2], index: 3, kind: output, shape index: {1}]  }
   0x1 LB: > { %s1680_s13 = sadd.s32 4294967295, %s1803_s12   ;;  %p1684_p0 = scmp.ge.s32.totalorder %s1803_s12, 1  ;;  %s1803_s12 = sphi %s1838_s12, %s14_s12  }
   0x2   : > { %p140_p1 = scmp.lt.s32.totalorder %s1803_s12, 5 }
   0x4   : > { %p141_p2 = pnand %p1684_p0, %p140_p1 }
   0x5   : > { %p1850_p3 = scmp.lt.s32.totalorder (!%p141_p2), %s1680_s13, 3  ;;  %s1806_s15 = smov (!%p141_p2), 2  }
   0x6   : > { %144 = sbr.rel (%p141_p2) target bundleno = 673 (0x2a1), region = 28  ;;  %s1807_s16 = smov (!%p141_p2), 32  }
   0x7   : > { %s1808_s18 = smov (!%p141_p2), 34   ;;  %s1809_s22 = smov (!%p141_p2), 64  }
   0x8   : > { %s1810_s23 = smov (!%p141_p2), 66   ;;  %s1811_s24 = smov (!%p141_p2), 127  }
   0x9   : > { %s1812_s25 = smov (!%p141_p2), 95   ;;  %s1813_s26 = smov (!%p141_p2), 126  }
   0xa   : > { %s1814_s27 = smov (!%p141_p2), 96   ;;  %s1815_s5 = smov (!%p141_p2), 94  }
   0xb   : > { %v191_v0 = vlaneseq  ;;  %v1805_v1 = vmov 0   ;;  %s2204_s13 = smov (!%p1850_p3, %s1680_s13), 3  ;;  %vm535_vm12 = vcmask 15360   ;;  %vm696_vm13 = vcmask 261120   ;;  %s1816_s6 = smov 63  }
   0xc   : > { %354 = vmatprep.mubr.bf16.mxu0 %v1805_v1  ;;  %395 = vmatprep.mubr.bf16.mxu1 %v1805_v1  ;;  %s1770_s17 = smul.u32 40, %s2204_s13  ;;  %vm537_vm14 = vcmask 1043456   ;;  %s1817_s7 = smov 62  }
   0xd   : > { %v192_v2 = vand.u32 127, %v191_v0  ;;  %s1688_s28 = sshll.u32 %s2204_s13, 2 }
   0xe   : > { %s172_s21 = scalar_lea.vmem %s2190_s0, %s1770_s17  ;;  %s181_s4 = scalar_lea.vmem %s2193_s3, %s1688_s28 }
   0xf   : > { %v193_v3 = vadd.s32 128, %v192_v2  ;;  %v200_v4 = vand.u32 31, %v192_v2  ;;  %v194_v5 = vadd.s32 256, %v192_v2  ;;  %v195_v6 = vadd.s32 384, %v192_v2  ;;  %v1881_v16 = vld [vmem:[%s172_s21] sm:$0xff]  ;;  %v1890_v19 = vld [vmem:[%s172_s21 + $0x8] sm:$0xff] }
  0x10   : > { %v1883_v17 = vld [vmem:[%s172_s21 + $0x14] sm:$0x33]  ;;  %v1892_v20 = vld [vmem:[%s172_s21 + $0x1c] sm:$0x33]  ;;  %v1908_v24 = vld [vmem:[%s172_s21 + $0x10] sm:$0xf] }
  0x11   : > { %v207_v7 = vand.u32 31, %v193_v3  ;;  %vm248_vm0 = vcmp.ne.s32.totalorder %v200_v4, 31  ;;  %v214_v8 = vand.u32 31, %v194_v5  ;;  %vm244_vm1 = vcmp.ne.s32.totalorder %v200_v4, 0  ;;  %v1910_v25 = vld [vmem:[%s172_s21 + $0x24] sm:$0x3] }
  0x12   : > { %v221_v9 = vand.u32 31, %v195_v6  ;;  %v1888_v18 = vcombine.low %v1881_v16, %v1883_v17  ;;  %v1896_v21 = vcombine.high %v1881_v16, %v1883_v17  ;;  %v1901_v22 = vcombine.low %v1890_v19, %v1892_v20 }
  0x13   : > { %vm249_vm2 = vcmp.ne.s32.totalorder %v207_v7, 31  ;;  %vm245_vm3 = vcmp.ne.s32.totalorder %v207_v7, 0  ;;  %vm250_vm4 = vcmp.ne.s32.totalorder %v214_v8, 31  ;;  %vm246_vm7 = vcmp.ne.s32.totalorder %v214_v8, 0 }
  0x14   : > { %vm525_vm5 = vmpackc.low %vm249_vm2, %vm248_vm0  ;;  %vm251_vm6 = vcmp.ne.s32.totalorder %v221_v9, 31  ;;  %vm247_vm8 = vcmp.ne.s32.totalorder %v221_v9, 0  ;;  %v1906_v23 = vcombine.high %v1890_v19, %v1892_v20  ;;  %v1915_v26 = vcombine.low %v1908_v24, %v1910_v25 }
  0x15   : > { %v527_v10 = vsel %vm525_vm5, 65537, %v1805_v1  ;;  %vm1855_vm9 = vmpackc.low %vm245_vm3, %vm244_vm1  ;;  %vm309_vm5 = vcmask 1045504  }
  0x16   : > { %529 = vrot.lane.b32.xlu0 %v527_v10, %s1806_s15  ;;  %v688_v12 = vsel %vm1855_vm9, 65537, %v1805_v1  ;;  %vm526_vm10 = vmpackc.low %vm251_vm6, %vm250_vm4  ;;  %v262_v62 = vsel %vm1855_vm9, %v1881_v16, 0  ;;  %v264_v63 = vsel %vm1855_vm9, %v1883_v17, 0  ;;  %vm300_vm4 = vcmask 1039360  }
  0x17   : > { %690 = vrot.lane.b32.xlu1 %v688_v12, %s1807_s16  ;;  %v528_v13 = vsel %vm526_vm10, 65537, %v1805_v1  ;;  %vm1863_vm11 = vmpackc.low %vm247_vm8, %vm246_vm7  ;;  %vm972_vm7 = vcmask 277504   ;;  %v1700_v6 = vcombine.high %v262_v62, %v264_v63  ;;  %v1699_v14 = vcombine.low %v262_v62, %v264_v63 }
  0x18   : > { %v689_v15 = vsel %vm1863_vm11, 65537, %v1805_v1  ;;  %v263_v8 = vsel %vm1863_vm11, %v1890_v19, 0  ;;  %v265_v9 = vsel %vm1863_vm11, %v1892_v20, 0  ;;  %vm1130_vm9 = vcmask 523264  }
  0x19   : > { %vm305_vm10 = vcmask 97280  }
  0x1a   : > { %531 = vrot.lane.b32.xlu0 %v528_v13, %s1806_s15 }
  0x1b   : > { %692 = vrot.lane.b32.xlu1 %v689_v15, %s1807_s16 }
  0x1e   : > { %966 = vrot.lane.b32.xlu0 %v527_v10, %s1808_s18 }
  0x1f   : > { %968 = vrot.lane.b32.xlu1 %v528_v13, %s1808_s18 }
  0x22   : > { %1124 = vrot.lane.b32.xlu0 %v688_v12, %s1809_s22 }
  0x23   : > { %1126 = vrot.lane.b32.xlu1 %v689_v15, %s1809_s22 }
  0x26   : > { %1399 = vrot.lane.b32.xlu0 %v527_v10, %s1810_s23 }
  0x27   : > { %1401 = vrot.lane.b32.xlu1 %v528_v13, %s1810_s23 }
  0x2a   : > { %290 = vrot.lane.b32.xlu0 %v1888_v18, %s1811_s24 }
  0x2b   : > { %292 = vrot.lane.b32.xlu1 %v1896_v21, %s1811_s24 }
  0x2e   : > { %294 = vrot.lane.b32.xlu0 %v1901_v22, %s1811_s24 }
  0x2f   : > { %296 = vrot.lane.b32.xlu1 %v1906_v23, %s1811_s24 }
  0x32   : > { %298 = vrot.lane.b32.xlu0 %v1915_v26, %s1811_s24  ;;  %s1769_s24 = sshll.u32 %s2204_s13, 4 }
  0x33   : > { %850 = vrot.lane.b32.xlu1 %v1888_v18, %s1812_s25 }
  0x36   : > { %852 = vrot.lane.b32.xlu0 %v1896_v21, %s1812_s25 }
  0x88   : > { %v530_v27 = vpop.permute.xlu0 %529 }
  0x89   : > { %v533_v28 = vrot.slane %v530_v27, 4  ;;  %v691_v29 = vpop.permute.xlu1 %690 }
  0x8a   : > { %v694_v31 = vrot.slane %v691_v29, 4 }
  0x8b   : > { %v536_v30 = vsel %vm535_vm12, %v533_v28, %v530_v27 }
  0x8c   : > { %v532_v32 = vpop.permute.xlu0 %531  ;;  %vm540_vm15 = vcmp.ne.s16.totalorder %v536_v30, 0  ;;  %v697_v36 = vsel %vm696_vm13, %v694_v31, %v691_v29  ;;  %v1702_v30 = vcombine.high %v263_v8, %v265_v9 }
  0x8d   : > { %v534_v33 = vrot.slane %v532_v32, 4  ;;  %v693_v34 = vpop.permute.xlu1 %692  ;;  %v543_v43 = vsel %vm540_vm15, %v1881_v16, 0  ;;  %v546_v44 = vsel %vm540_vm15, %v1883_v17, 0  ;;  %vm700_vm2 = vcmp.ne.s16.totalorder %v697_v36, 0 }
  0x8e   : > { %v695_v35 = vrot.slane %v693_v34, 4  ;;  %v1708_v50 = vcombine.low %v543_v43, %v546_v44  ;;  %v703_v52 = vsel %vm700_vm2, %v1881_v16, 0  ;;  %v706_v53 = vsel %vm700_vm2, %v1883_v17, 0 }
  0x8f   : > { %vm542_vm0 = vcmp.ne.s16.totalorder %v534_v33, 0  ;;  %v538_v40 = vsel %vm537_vm14, %v533_v28, %v534_v33  ;;  %v1709_v55 = vcombine.high %v543_v43, %v546_v44  ;;  %v1719_v57 = vcombine.high %v703_v52, %v706_v53 }
  0x90   : > { %v545_v37 = vsel %vm542_vm0, %v1908_v24, 0  ;;  %v548_v38 = vsel %vm542_vm0, %v1910_v25, 0  ;;  %v1927_v39 = vpop.permute.xlu0 %966  ;;  %vm702_vm1 = vcmp.ne.s16.totalorder %v695_v35, 0  ;;  %v539_v47 = vsel %vm535_vm12, %v538_v40, %v532_v32 }
  0x91   : > { %v1712_v41 = vcombine.low %v545_v37, %v548_v38  ;;  %v1930_v42 = vpop.permute.xlu1 %968  ;;  %v705_v45 = vsel %vm702_vm1, %v1908_v24, 0  ;;  %v708_v46 = vsel %vm702_vm1, %v1910_v25, 0  ;;  %vm541_vm3 = vcmp.ne.s16.totalorder %v539_v47, 0  ;;  %v1689_v38 = vld [vmem:[%s2191_s1 + $0x2] sm:$0x3] }
  0x92   : > { %v1722_v48 = vcombine.low %v705_v45, %v708_v46  ;;  %v698_v54 = vsel %vm537_vm14, %v694_v31, %v695_v35  ;;  %v544_v59 = vsel %vm541_vm3, %v1890_v19, 0  ;;  %v547_v60 = vsel %vm541_vm3, %v1892_v20, 0 }
  0x93   : > { %580 = vrot.lane.b32.xlu1 %v1712_v41, %s1813_s26  ;;  %v699_v61 = vsel %vm696_vm13, %v698_v54, %v693_v34  ;;  %v1718_v0 = vcombine.low %v703_v52, %v706_v53  ;;  %v1710_v3 = vcombine.low %v544_v59, %v547_v60  ;;  %v970_v4 = vrot.slane %v1927_v39, 4 }
  0x94   : > { %v1938_v49 = vpop.permute.xlu0 %1124  ;;  %740 = vrot.lane.b32.xlu0 %v1722_v48, %s1814_s27  ;;  %vm701_vm6 = vcmp.ne.s16.totalorder %v699_v61, 0  ;;  %v1711_v10 = vcombine.high %v544_v59, %v547_v60  ;;  %v1701_v31 = vcombine.low %v263_v8, %v265_v9  ;;  %v971_v33 = vrot.slane %v1930_v42, 4 }
  0x95   : > { %v1940_v51 = vpop.permute.xlu1 %1126  ;;  %v704_v13 = vsel %vm701_vm6, %v1890_v19, 0  ;;  %v707_v15 = vsel %vm701_vm6, %v1892_v20, 0  ;;  %v973_v27 = vsel %vm972_vm7, %v970_v4, %v1927_v39  ;;  %v1128_v34 = vrot.slane %v1938_v49, 4 }
  0x96   : > { %vm976_vm8 = vcmp.ne.s16.totalorder %v973_v27, 0  ;;  %v1720_v32 = vcombine.low %v704_v13, %v707_v15  ;;  %v424_v40 = vsel %vm309_vm5, %v1699_v14, 0  ;;  %v974_v44 = vsel %vm537_vm14, %v970_v4, %v971_v33 }
  0x97   : > { %572 = vrot.lane.b32.xlu1 %v1708_v50, %s1813_s26  ;;  %v979_v41 = vsel %vm976_vm8, %v1881_v16, 0  ;;  %v982_v43 = vsel %vm976_vm8, %v1883_v17, 0  ;;  %vm2001_vm11 = vcmp.ne.s16.totalorder %v971_v33, 0  ;;  %v1131_v46 = vsel %vm1130_vm9, %v1128_v34, %v1938_v49 }
  0x98   : > { %v1947_v56 = vpop.permute.xlu0 %1399  ;;  %574 = vrot.lane.b32.xlu0 %v1709_v55, %s1813_s26  ;;  %v430_v47 = vsel %vm309_vm5, %v1701_v31, 0  ;;  %v1721_v48 = vcombine.high %v704_v13, %v707_v15  ;;  %v1129_v50 = vrot.slane %v1940_v51, 4  ;;  %v1733_v52 = vcombine.low %v979_v41, %v982_v43  ;;  %v1717_v55 = vld [vmem:[%s2191_s1 + $0x6] sm:$0x3] }
  0x99   : > { %v1949_v58 = vpop.permute.xlu1 %1401  ;;  %v975_v49 = vsel %vm972_vm7, %v974_v44, %v1930_v42  ;;  %v981_v53 = vsel %vm2001_vm11, %v1908_v24, 0  ;;  %v984_v54 = vsel %vm2001_vm11, %v1910_v25, 0  ;;  %vm1134_vm12 = vcmp.ne.s16.totalorder %v1131_v46, 0  ;;  %v266_v42 = vld [vmem:[%s2191_s1] sm:$0x3] }
  0x9a   : > { %vm2025_vm13 = vcmp.ne.s16.totalorder %v1129_v50, 0  ;;  %vm977_vm15 = vcmp.ne.s16.totalorder %v975_v49, 0  ;;  %v1137_v59 = vsel %vm1134_vm12, %v1881_v16, 0  ;;  %v1140_v60 = vsel %vm1134_vm12, %v1883_v17, 0 }
  0x9b   : > { %734 = vrot.lane.b32.xlu1 %v1719_v57, %s1814_s27  ;;  %v1734_v57 = vcombine.high %v979_v41, %v982_v43  ;;  %v1737_v61 = vcombine.low %v981_v53, %v984_v54  ;;  %v1139_v62 = vsel %vm2025_vm13, %v1908_v24, 0  ;;  %v1142_v63 = vsel %vm2025_vm13, %v1910_v25, 0 }
  0x9c   : > { %v291_v2 = vpop.permute.xlu0 %290  ;;  %732 = vrot.lane.b32.xlu0 %v1718_v0, %s1814_s27  ;;  %v980_v0 = vsel %vm977_vm15, %v1890_v19, 0  ;;  %v1743_v4 = vcombine.low %v1137_v59, %v1140_v60  ;;  %v1744_v8 = vcombine.high %v1137_v59, %v1140_v60  ;;  %vm1405_vm1 = vcmask 539648  }
  0x9d   : > { %v293_v5 = vpop.permute.xlu1 %292  ;;  %vm582_vm6 = vcmask 1031168   ;;  %vm742_vm7 = vcmask 785408   ;;  %vm860_vm8 = vcmask 777216   ;;  %vm1018_vm11 = vcmask 769024  }
  0x9e   : > { %v301_v7 = vsel %vm300_vm4, %v291_v2, %v293_v5  ;;  %v983_v2 = vsel %vm977_vm15, %v1892_v20, 0  ;;  %vm1293_vm12 = vcmask 515072  }
  0x9f   : > { %576 = vrot.lane.b32.xlu1 %v1710_v3, %s1813_s26  ;;  %v311_v12 = vsel %vm309_vm5, %v301_v7, 0  ;;  %v1132_v3 = vsel %vm537_vm14, %v1128_v34, %v1129_v50  ;;  %v1735_v7 = vcombine.low %v980_v0, %v983_v2  ;;  %v1736_v9 = vcombine.high %v980_v0, %v983_v2 }
  0xa0   : > { %v295_v11 = vpop.permute.xlu0 %294  ;;  %578 = vrot.lane.b32.xlu0 %v1711_v10, %s1813_s26 }
  0xa1   : > { %v302_v28 = vsel %vm300_vm4, %v293_v5, %v295_v11  ;;  %v297_v29 = vpop.permute.xlu1 %296  ;;  %v1747_v5 = vcombine.low %v1139_v62, %v1142_v63 }
  0xa2   : > { %1695 = vmatprep.subr.msk.bf16.mxu0 %vm309_vm5, %v302_v28  ;;  %v303_v37 = vsel %vm300_vm4, %v295_v11, %v297_v29 }
  0xa3   : > { %854 = vrot.lane.b32.xlu1 %v1901_v22, %s1812_s25  ;;  %337 = vmatpush1.bf16.msra.mxu0 %v311_v12  ;;  %v317_v39 = vsel %vm309_vm5, %v303_v37, 0  ;;  %v1403_v12 = vrot.slane %v1947_v56, 4 }
  0xa4   : > { %v299_v35 = vpop.permute.xlu0 %298  ;;  %1703 = vmatprep.subr.msk.bf16.mxu0 %vm309_vm5, %v1700_v6  ;;  %736 = vrot.lane.b32.xlu0 %v1720_v32, %s1814_s27  ;;  %v1133_v6 = vsel %vm1130_vm9, %v1132_v3, %v1940_v51  ;;  %v1404_v51 = vrot.slane %v1949_v58, 4 }
  0xa5   : > { %v304_v36 = vsel %vm300_vm4, %v297_v29, %v299_v35  ;;  %vm1135_vm0 = vcmp.ne.s16.totalorder %v1133_v6, 0  ;;  %v1406_v27 = vsel %vm1405_vm1, %v1403_v12, %v1947_v56 }
  0xa6   : > { %1697 = vmatprep.subr.msk.bf16.mxu1 %vm309_vm5, %v304_v36  ;;  %1696 = vmatmul.mubr.msk.bf16.vlgmr.msra.gmra.mxu0 %vm305_vm10, %v1689_v38  ;;  %v1138_v10 = vsel %vm1135_vm0, %v1890_v19, 0  ;;  %v1141_v11 = vsel %vm1135_vm0, %v1892_v20, 0  ;;  %v1407_v28 = vsel %vm537_vm14, %v1403_v12, %v1404_v51  ;;  %vm1409_vm2 = vcmp.ne.s16.totalorder %v1406_v27, 0 }
  0xa7   : > { %858 = vrot.lane.b32.xlu1 %v1915_v26, %s1812_s25  ;;  %378 = vmatpush1.bf16.msra.mxu1 %v317_v39  ;;  %v1745_v13 = vcombine.low %v1138_v10, %v1141_v11  ;;  %v1746_v15 = vcombine.high %v1138_v10, %v1141_v11  ;;  %v1408_v29 = vsel %vm1405_vm1, %v1407_v28, %v1949_v58  ;;  %v1412_v14 = vsel %vm1409_vm2, %v1881_v16, 0 }
  0xa8   : > { %1705 = vmatprep.subr.msk.bf16.mxu1 %vm309_vm5, %v1702_v30  ;;  %450 = vmatpush1.bf16.msra.mxu0 %v424_v40  ;;  %v1415_v30 = vsel %vm1409_vm2, %v1883_v17, 0  ;;  %vm1410_vm3 = vcmp.ne.s16.totalorder %v1408_v29, 0  ;;  %vm1411_vm4 = vcmp.ne.s16.totalorder %v1404_v51, 0  ;;  %v853_v32 = vpop.permute.xlu0 %852  ;;  %v1707_v40 = vld [vmem:[%s2191_s1 + $0x4] sm:$0x3] }
  0xa9   : > { %467 = vmatprep.mubr.bf16.mxu0 %v1805_v1  ;;  %856 = vrot.lane.b32.xlu0 %v1906_v23, %s1812_s25  ;;  %v1413_v56 = vsel %vm1410_vm3, %v1890_v19, 0  ;;  %v1416_v31 = vsel %vm1410_vm3, %v1892_v20, 0  ;;  %v1414_v16 = vsel %vm1411_vm4, %v1908_v24, 0  ;;  %v1417_v17 = vsel %vm1411_vm4, %v1910_v25, 0  ;;  %v851_v19 = vpop.permute.xlu1 %850 }
  0xaa   : > { %1698 = vmatmul.mubr.msk.bf16.vlgmr.msra.gmra.mxu1 %vm305_vm10, %v1689_v38  ;;  %v1760_v58 = vcombine.low %v1413_v56, %v1416_v31  ;;  %v861_v53 = vsel %vm860_vm8, %v851_v19, %v853_v32 }
  0xab   : > { %738 = vrot.lane.b32.xlu1 %v1721_v48, %s1814_s27  ;;  %491 = vmatpush1.bf16.msra.mxu1 %v430_v47  ;;  %v869_v60 = vsel %vm309_vm5, %v861_v53, 0  ;;  %s177_s27 = scalar_lea.vmem %s2192_s2, %s1769_s24 }
  0xac   : > { %508 = vmatprep.mubr.bf16.mxu1 %v1805_v1 }
  0xad   : > { %1008 = vrot.lane.b32.xlu0 %v1733_v52, %s1815_s5 }
  0xae   : > { %1704 = vmatmul.mubr.msk.bf16.vlgmr.msra.gmra.mxu0 %vm305_vm10, %v266_v42 }
  0xaf   : > { %1010 = vrot.lane.b32.xlu1 %v1734_v57, %s1815_s5  ;;  %634 = vmatprep.mubr.bf16.mxu0 %v1805_v1 }
  0xb1   : > { %1016 = vrot.lane.b32.xlu0 %v1737_v61, %s1815_s5 }
  0xb2   : > { %1706 = vmatmul.mubr.msk.bf16.vlgmr.msra.gmra.mxu1 %vm305_vm10, %v266_v42 }
  0xb3   : > { %1166 = vrot.lane.b32.xlu1 %v1743_v4, %s1809_s22  ;;  %675 = vmatprep.mubr.bf16.mxu1 %v1805_v1 }
  0xb5   : > { %1012 = vrot.lane.b32.xlu0 %v1735_v7, %s1815_s5 }
  0xb7   : > { %1174 = vrot.lane.b32.xlu1 %v1747_v5, %s1809_s22  ;;  %v1727_v5 = vld [vmem:[%s2191_s1 + $0x8] sm:$0x3] }
  0xb9   : > { %1168 = vrot.lane.b32.xlu0 %v1744_v8, %s1809_s22 }
  0xbb   : > { %1014 = vrot.lane.b32.xlu1 %v1736_v9, %s1815_s5 }
  0xbd   : > { %1283 = vrot.lane.b32.xlu0 %v1888_v18, %s1816_s6  ;;  %v1758_v18 = vcombine.low %v1412_v14, %v1415_v30 }
  0xbf   : > { %1170 = vrot.lane.b32.xlu1 %v1745_v13, %s1809_s22  ;;  %v1732_v13 = vld [vmem:[%s2191_s1 + $0xa] sm:$0x3] }
  0xc1   : > { %1172 = vrot.lane.b32.xlu0 %v1746_v15, %s1809_s22 }
  0xc3   : > { %1285 = vrot.lane.b32.xlu1 %v1896_v21, %s1816_s6  ;;  %v1759_v21 = vcombine.high %v1412_v14, %v1415_v30 }
  0xc5   : > { %1287 = vrot.lane.b32.xlu0 %v1901_v22, %s1816_s6  ;;  %v1761_v22 = vcombine.high %v1413_v56, %v1416_v31 }
  0xc7   : > { %1289 = vrot.lane.b32.xlu1 %v1906_v23, %s1816_s6  ;;  %v1762_v23 = vcombine.low %v1414_v16, %v1417_v17 }
  0xc9   : > { %1291 = vrot.lane.b32.xlu0 %v1915_v26, %s1816_s6 }
  0xcb   : > { %1441 = vrot.lane.b32.xlu1 %v1758_v18, %s1817_s7 }
  0xcd   : > { %1443 = vrot.lane.b32.xlu0 %v1759_v21, %s1817_s7  ;;  %v1742_v21 = vld [vmem:[%s2191_s1 + $0xc] sm:$0x3] }
  0xcf   : > { %1445 = vrot.lane.b32.xlu1 %v1760_v58, %s1817_s7 }
  0xd1   : > { %1447 = vrot.lane.b32.xlu0 %v1761_v22, %s1817_s7 }
  0xd3   : > { %1449 = vrot.lane.b32.xlu1 %v1762_v23, %s1817_s7 }
 0x105   : > { %v581_v20 = vpop.permute.xlu1 %580 }
 0x106   : > { %v741_v33 = vpop.permute.xlu0 %740 }
 0x109   : > { %v573_v26 = vpop.permute.xlu1 %572 }
 0x10a   : > { %v575_v34 = vpop.permute.xlu0 %574 }
 0x10b   : > { %v583_v36 = vsel %vm582_vm6, %v573_v26, %v575_v34 }
 0x10c   : > { %v591_v25 = vsel %vm309_vm5, %v583_v36, 0  ;;  %v1752_v36 = vld [vmem:[%s2191_s1 + $0xe] sm:$0x3] }
 0x10d   : > { %v735_v35 = vpop.permute.xlu1 %734 }
 0x10e   : > { %v733_v37 = vpop.permute.xlu0 %732 }
 0x10f   : > { %v743_v46 = vsel %vm742_vm7, %v733_v37, %v735_v35 }
 0x110   : > { %v751_v52 = vsel %vm309_vm5, %v743_v46, 0 }
 0x111   : > { %v577_v38 = vpop.permute.xlu1 %576 }
 0x112   : > { %v584_v24 = vsel %vm582_vm6, %v575_v34, %v577_v38  ;;  %v579_v39 = vpop.permute.xlu0 %578 }
 0x113   : > { %1713 = vmatprep.subr.msk.bf16.mxu0 %vm309_vm5, %v584_v24  ;;  %v585_v41 = vsel %vm582_vm6, %v577_v38, %v579_v39  ;;  %v586_v43 = vsel %vm582_vm6, %v579_v39, %v581_v20 }
 0x114   : > { %617 = vmatpush1.bf16.msra.mxu0 %v591_v25  ;;  %v597_v45 = vsel %vm309_vm5, %v585_v41, 0  ;;  %1715 = vmatprep.subr.msk.bf16.mxu1 %vm309_vm5, %v586_v43 }
 0x115   : > { %v855_v44 = vpop.permute.xlu1 %854  ;;  %658 = vmatpush1.bf16.msra.mxu1 %v597_v45 }
 0x116   : > { %v737_v47 = vpop.permute.xlu0 %736  ;;  %v862_v49 = vsel %vm860_vm8, %v853_v32, %v855_v44 }
 0x117   : > { %1714 = vmatmul.mubr.msk.bf16.vlgmr.msra.gmra.mxu0 %vm305_vm10, %v1707_v40  ;;  %v744_v48 = vsel %vm742_vm7, %v735_v35, %v737_v47 }
 0x118   : > { %794 = vmatprep.mubr.bf16.mxu0 %v1805_v1  ;;  %1716 = vmatmul.mubr.msk.bf16.vlgmr.msra.gmra.mxu1 %vm305_vm10, %v1707_v40 }
 0x119   : > { %v859_v50 = vpop.permute.xlu1 %858  ;;  %1723 = vmatprep.subr.msk.bf16.mxu0 %vm309_vm5, %v744_v48  ;;  %835 = vmatprep.mubr.bf16.mxu1 %v1805_v1 }
 0x11a   : > { %777 = vmatpush1.bf16.msra.mxu0 %v751_v52 }
 0x11b   : > { %v857_v54 = vpop.permute.xlu0 %856  ;;  %1728 = vmatprep.subr.msk.bf16.mxu0 %vm309_vm5, %v862_v49 }
 0x11c   : > { %v863_v62 = vsel %vm860_vm8, %v855_v44, %v857_v54  ;;  %v864_v63 = vsel %vm860_vm8, %v857_v54, %v859_v50  ;;  %v1757_v44 = vld [vmem:[%s2191_s1 + $0x10] sm:$0x3] }
 0x11d   : > { %v739_v57 = vpop.permute.xlu1 %738  ;;  %v875_v3 = vsel %vm309_vm5, %v863_v62, 0 }
 0x11e   : > { %v745_v42 = vsel %vm742_vm7, %v737_v47, %v739_v57  ;;  %v746_v59 = vsel %vm742_vm7, %v739_v57, %v741_v33 }
 0x11f   : > { %v757_v61 = vsel %vm309_vm5, %v745_v42, 0  ;;  %1724 = vmatmul.mubr.msk.bf16.vlgmr.msra.gmra.mxu0 %vm305_vm10, %v1717_v55  ;;  %1725 = vmatprep.subr.msk.bf16.mxu1 %vm309_vm5, %v746_v59  ;;  %v1009_v0 = vpop.permute.xlu0 %1008 }
 0x120   : > { %895 = vmatpush1.bf16.msra.mxu0 %v869_v60  ;;  %818 = vmatpush1.bf16.msra.mxu1 %v757_v61 }
 0x121   : > { %v1011_v2 = vpop.permute.xlu1 %1010  ;;  %1730 = vmatprep.subr.msk.bf16.mxu1 %vm309_vm5, %v864_v63  ;;  %912 = vmatprep.mubr.bf16.mxu0 %v1805_v1 }
 0x122   : > { %v1019_v7 = vsel %vm1018_vm11, %v1009_v0, %v1011_v2 }
 0x123   : > { %1726 = vmatmul.mubr.msk.bf16.vlgmr.msra.gmra.mxu1 %vm305_vm10, %v1717_v55  ;;  %v1017_v4 = vpop.permute.xlu0 %1016  ;;  %v1027_v11 = vsel %vm309_vm5, %v1019_v7, 0 }
 0x124   : > { %936 = vmatpush1.bf16.msra.mxu1 %v875_v3  ;;  %953 = vmatprep.mubr.bf16.mxu1 %v1805_v1 }
 0x125   : > { %v1167_v6 = vpop.permute.xlu1 %1166 }
 0x127   : > { %1729 = vmatmul.mubr.msk.bf16.vlgmr.msra.gmra.mxu0 %vm305_vm10, %v1727_v5  ;;  %v1013_v8 = vpop.permute.xlu0 %1012 }
 0x128   : > { %1070 = vmatprep.mubr.bf16.mxu0 %v1805_v1  ;;  %v1020_v9 = vsel %vm1018_vm11, %v1011_v2, %v1013_v8 }
 0x129   : > { %v1175_v10 = vpop.permute.xlu1 %1174  ;;  %1738 = vmatprep.subr.msk.bf16.mxu0 %vm309_vm5, %v1020_v9 }
 0x12a   : > { %1053 = vmatpush1.bf16.msra.mxu0 %v1027_v11 }
 0x12b   : > { %1731 = vmatmul.mubr.msk.bf16.vlgmr.msra.gmra.mxu1 %vm305_vm10, %v1727_v5  ;;  %v1169_v12 = vpop.permute.xlu0 %1168 }
 0x12c   : > { %1111 = vmatprep.mubr.bf16.mxu1 %v1805_v1  ;;  %v1176_v29 = vsel %vm1130_vm9, %v1167_v6, %v1169_v12 }
 0x12d   : > { %v1015_v51 = vpop.permute.xlu1 %1014  ;;  %v1184_v56 = vsel %vm309_vm5, %v1176_v29, 0 }
 0x12e   : > { %v1021_v15 = vsel %vm1018_vm11, %v1013_v8, %v1015_v51  ;;  %v1022_v27 = vsel %vm1018_vm11, %v1015_v51, %v1017_v4 }
 0x12f   : > { %v1033_v28 = vsel %vm309_vm5, %v1021_v15, 0  ;;  %1739 = vmatmul.mubr.msk.bf16.vlgmr.msra.gmra.mxu0 %vm305_vm10, %v1732_v13  ;;  %1740 = vmatprep.subr.msk.bf16.mxu1 %vm309_vm5, %v1022_v27  ;;  %v1284_v14 = vpop.permute.xlu0 %1283 }
 0x130   : > { %1094 = vmatpush1.bf16.msra.mxu1 %v1033_v28  ;;  %1227 = vmatprep.mubr.bf16.mxu0 %v1805_v1 }
 0x131   : > { %v1171_v30 = vpop.permute.xlu1 %1170 }
 0x132   : > { %v1177_v18 = vsel %vm1130_vm9, %v1169_v12, %v1171_v30 }
 0x133   : > { %1741 = vmatmul.mubr.msk.bf16.vlgmr.msra.gmra.mxu1 %vm305_vm10, %v1732_v13  ;;  %1748 = vmatprep.subr.msk.bf16.mxu0 %vm309_vm5, %v1177_v18  ;;  %v1173_v31 = vpop.permute.xlu0 %1172 }
 0x134   : > { %1210 = vmatpush1.bf16.msra.mxu0 %v1184_v56  ;;  %1268 = vmatprep.mubr.bf16.mxu1 %v1805_v1  ;;  %v1178_v58 = vsel %vm1130_vm9, %v1171_v30, %v1173_v31  ;;  %v1179_v16 = vsel %vm1130_vm9, %v1173_v31, %v1175_v10  ;;  %vm1451_vm9 = vcmask 506880  }
 0x135   : > { %v1286_v17 = vpop.permute.xlu1 %1285  ;;  %v1190_v22 = vsel %vm309_vm5, %v1178_v58, 0  ;;  %1750 = vmatprep.subr.msk.bf16.mxu1 %vm309_vm5, %v1179_v16 }
 0x136   : > { %v1294_v23 = vsel %vm1293_vm12, %v1284_v14, %v1286_v17  ;;  %1251 = vmatpush1.bf16.msra.mxu1 %v1190_v22 }
 0x137   : > { %1749 = vmatmul.mubr.msk.bf16.vlgmr.msra.gmra.mxu0 %vm305_vm10, %v1742_v21  ;;  %v1302_v19 = vsel %vm309_vm5, %v1294_v23, 0  ;;  %v1288_v32 = vpop.permute.xlu0 %1287 }
 0x138   : > { %1345 = vmatprep.mubr.bf16.mxu0 %v1805_v1  ;;  %v1295_v20 = vsel %vm1293_vm12, %v1286_v17, %v1288_v32 }
 0x139   : > { %v1290_v33 = vpop.permute.xlu1 %1289  ;;  %1753 = vmatprep.subr.msk.bf16.mxu0 %vm309_vm5, %v1295_v20 }
 0x13a   : > { %v1296_v26 = vsel %vm1293_vm12, %v1288_v32, %v1290_v33  ;;  %1328 = vmatpush1.bf16.msra.mxu0 %v1302_v19 }
 0x13b   : > { %1751 = vmatmul.mubr.msk.bf16.vlgmr.msra.gmra.mxu1 %vm305_vm10, %v1742_v21  ;;  %v1308_v34 = vsel %vm309_vm5, %v1296_v26, 0  ;;  %v1292_v35 = vpop.permute.xlu0 %1291 }
 0x13c   : > { %1386 = vmatprep.mubr.bf16.mxu1 %v1805_v1  ;;  %v1297_v37 = vsel %vm1293_vm12, %v1290_v33, %v1292_v35 }
 0x13d   : > { %v1442_v38 = vpop.permute.xlu1 %1441  ;;  %1755 = vmatprep.subr.msk.bf16.mxu1 %vm309_vm5, %v1297_v37 }
 0x13e   : > { %1369 = vmatpush1.bf16.msra.mxu1 %v1308_v34 }
 0x13f   : > { %1754 = vmatmul.mubr.msk.bf16.vlgmr.msra.gmra.mxu0 %vm305_vm10, %v1752_v36  ;;  %v1444_v24 = vpop.permute.xlu0 %1443 }
 0x140   : > { %1503 = vmatprep.mubr.bf16.mxu0 %v1805_v1  ;;  %v1452_v25 = vsel %vm1451_vm9, %v1442_v38, %v1444_v24 }
 0x141   : > { %v1446_v39 = vpop.permute.xlu1 %1445  ;;  %v1460_v41 = vsel %vm309_vm5, %v1452_v25, 0 }
 0x142   : > { %v1453_v40 = vsel %vm1451_vm9, %v1444_v24, %v1446_v39 }
 0x143   : > { %1756 = vmatmul.mubr.msk.bf16.vlgmr.msra.gmra.mxu1 %vm305_vm10, %v1752_v36  ;;  %1763 = vmatprep.subr.msk.bf16.mxu0 %vm309_vm5, %v1453_v40  ;;  %v1448_v43 = vpop.permute.xlu0 %1447 }
 0x144   : > { %1486 = vmatpush1.bf16.msra.mxu0 %v1460_v41  ;;  %1544 = vmatprep.mubr.bf16.mxu1 %v1805_v1  ;;  %v1454_v45 = vsel %vm1451_vm9, %v1446_v39, %v1448_v43 }
 0x145   : > { %v1450_v46 = vpop.permute.xlu1 %1449  ;;  %v1466_v48 = vsel %vm309_vm5, %v1454_v45, 0 }
 0x146   : > { %v1455_v47 = vsel %vm1451_vm9, %v1448_v43, %v1450_v46 }
 0x147   : > { %1764 = vmatmul.mubr.msk.bf16.vlgmr.msra.gmra.mxu0 %vm305_vm10, %v1757_v44  ;;  %1765 = vmatprep.subr.msk.bf16.mxu1 %vm309_vm5, %v1455_v47  ;;  %vm1590_vm5 = vcmask 7168  }
 0x148   : > { %1527 = vmatpush1.bf16.msra.mxu1 %v1466_v48 }
 0x14b   : > { %1766 = vmatmul.mubr.msk.bf16.vlgmr.msra.gmra.mxu1 %vm305_vm10, %v1757_v44  ;;  %vm1592_vm10 = vcmask 11264  }
 0x166   : > { %v356_v50 = vpop.f32.mrf.mxu0 }
 0x168   : > { %v358_v52 = vpop.f32.mrf.mxu0 }
 0x16a   : > { %v397_v49 = vpop.f32.mrf.mxu1  ;;  %v360_v53 = vpop.f32.mrf.mxu0 }
 0x16c   : > { %v399_v54 = vpop.f32.mrf.mxu1  ;;  %v361_v1 = vpop.f32.mrf.mxu0 }
 0x16e   : > { %v401_v55 = vpop.f32.mrf.mxu1  ;;  %v469_v57 = vpop.f32.mrf.mxu0 }
 0x16f   : > { %v470_v59 = vadd.f32 %v469_v57, %v356_v50 }
 0x170   : > { %v402_v42 = vpop.f32.mrf.mxu1  ;;  %v471_v60 = vpop.f32.mrf.mxu0 }
 0x171   : > { %v472_v62 = vadd.f32 %v471_v60, %v358_v52 }
 0x172   : > { %v510_v61 = vpop.f32.mrf.mxu1  ;;  %v473_v2 = vpop.f32.mrf.mxu0 }
 0x173   : > { %v511_v63 = vadd.f32 %v510_v61, %v397_v49 }
 0x174   : > { %v512_v0 = vpop.f32.mrf.mxu1  ;;  %v474_v5 = vpop.f32.mrf.mxu0 }
 0x175   : > { %v513_v3 = vadd.f32 %v512_v0, %v399_v54 }
 0x176   : > { %v514_v4 = vpop.f32.mrf.mxu1 }
 0x178   : > { %v515_v6 = vpop.f32.mrf.mxu1 }
 0x1d7   : > { %v636_v7 = vpop.f32.mrf.mxu0 }
 0x1d8   : > { %v677_v9 = vpop.f32.mrf.mxu1  ;;  %v684_v40 = vadd.f32 %v636_v7, %v470_v59 }
 0x1d9   : > { %v638_v8 = vpop.f32.mrf.mxu0  ;;  %v686_v48 = vadd.f32 %v677_v9, %v511_v63 }
 0x1da   : > { %v679_v11 = vpop.f32.mrf.mxu1  ;;  %v685_v44 = vadd.f32 %v638_v8, %v472_v62 }
 0x1db   : > { %v640_v10 = vpop.f32.mrf.mxu0  ;;  %v687_v49 = vadd.f32 %v679_v11, %v513_v3 }
 0x1dc   : > { %v681_v13 = vpop.f32.mrf.mxu1 }
 0x1dd   : > { %v641_v12 = vpop.f32.mrf.mxu0 }
 0x1de   : > { %v682_v15 = vpop.f32.mrf.mxu1 }
 0x1df   : > { %v796_v51 = vpop.f32.mrf.mxu0 }
 0x1e0   : > { %v844_v45 = vadd.f32 %v796_v51, %v684_v40 }
 0x1e1   : > { %v798_v27 = vpop.f32.mrf.mxu0 }
 0x1e2   : > { %v845_v50 = vadd.f32 %v798_v27, %v685_v44 }
 0x1e3   : > { %v800_v28 = vpop.f32.mrf.mxu0  ;;  %v837_v29 = vpop.f32.mrf.mxu1 }
 0x1e4   : > { %v846_v1 = vadd.f32 %v837_v29, %v686_v48 }
 0x1e5   : > { %v801_v14 = vpop.f32.mrf.mxu0  ;;  %v839_v30 = vpop.f32.mrf.mxu1 }
 0x1e6   : > { %v847_v42 = vadd.f32 %v839_v30, %v687_v49 }
 0x1e7   : > { %v841_v18 = vpop.f32.mrf.mxu1  ;;  %v914_v56 = vpop.f32.mrf.mxu0 }
 0x1e8   : > { %v962_v52 = vadd.f32 %v914_v56, %v844_v45 }
 0x1e9   : > { %v842_v31 = vpop.f32.mrf.mxu1  ;;  %v916_v21 = vpop.f32.mrf.mxu0 }
 0x1ea   : > { %v963_v55 = vadd.f32 %v916_v21, %v845_v50 }
 0x1eb   : > { %v918_v58 = vpop.f32.mrf.mxu0  ;;  %v955_v16 = vpop.f32.mrf.mxu1 }
 0x1ec   : > { %v964_v59 = vadd.f32 %v955_v16, %v846_v1 }
 0x1ed   : > { %v919_v17 = vpop.f32.mrf.mxu0  ;;  %v957_v22 = vpop.f32.mrf.mxu1 }
 0x1ee   : > { %v965_v62 = vadd.f32 %v957_v22, %v847_v42 }
 0x1ef   : > { %v959_v23 = vpop.f32.mrf.mxu1  ;;  %v1072_v19 = vpop.f32.mrf.mxu0 }
 0x1f0   : > { %v1120_v57 = vadd.f32 %v1072_v19, %v962_v52 }
 0x1f1   : > { %v960_v32 = vpop.f32.mrf.mxu1  ;;  %v1074_v20 = vpop.f32.mrf.mxu0 }
 0x1f2   : > { %v1121_v0 = vadd.f32 %v1074_v20, %v963_v55 }
 0x1f3   : > { %v1076_v33 = vpop.f32.mrf.mxu0  ;;  %v1113_v26 = vpop.f32.mrf.mxu1 }
 0x1f4   : > { %v1122_v6 = vadd.f32 %v1113_v26, %v964_v59 }
 0x1f5   : > { %v1077_v34 = vpop.f32.mrf.mxu0  ;;  %v1115_v35 = vpop.f32.mrf.mxu1 }
 0x1f6   : > { %v1123_v8 = vadd.f32 %v1115_v35, %v965_v62 }
 0x1f7   : > { %v1117_v36 = vpop.f32.mrf.mxu1  ;;  %v1229_v37 = vpop.f32.mrf.mxu0 }
 0x1f8   : > { %v1277_v2 = vadd.f32 %v1229_v37, %v1120_v57 }
 0x1f9   : > { %v1118_v38 = vpop.f32.mrf.mxu1  ;;  %v1231_v24 = vpop.f32.mrf.mxu0 }
 0x1fa   : > { %v1278_v63 = vadd.f32 %v1231_v24, %v1121_v0 }
 0x1fb   : > { %v1233_v25 = vpop.f32.mrf.mxu0  ;;  %v1270_v39 = vpop.f32.mrf.mxu1 }
 0x1fc   : > { %v1279_v10 = vadd.f32 %v1270_v39, %v1122_v6 }
 0x1fd   : > { %v1234_v41 = vpop.f32.mrf.mxu0  ;;  %v1272_v43 = vpop.f32.mrf.mxu1 }
 0x1fe   : > { %v1280_v13 = vadd.f32 %v1272_v43, %v1123_v8 }
 0x1ff   : > { %v1274_v46 = vpop.f32.mrf.mxu1  ;;  %v1347_v47 = vpop.f32.mrf.mxu0 }
 0x200   : > { %v1395_v7 = vadd.f32 %v1347_v47, %v1277_v2 }
 0x201   : > { %v1275_v53 = vpop.f32.mrf.mxu1  ;;  %v1349_v54 = vpop.f32.mrf.mxu0 }
 0x202   : > { %v1396_v11 = vadd.f32 %v1349_v54, %v1278_v63 }
 0x203   : > { %v1351_v60 = vpop.f32.mrf.mxu0  ;;  %v1388_v61 = vpop.f32.mrf.mxu1 }
 0x204   : > { %v1397_v27 = vadd.f32 %v1388_v61, %v1279_v10 }
 0x205   : > { %v1352_v4 = vpop.f32.mrf.mxu0  ;;  %v1390_v5 = vpop.f32.mrf.mxu1 }
 0x206   : > { %v1398_v14 = vadd.f32 %v1390_v5, %v1280_v13 }
 0x207   : > { %v1392_v3 = vpop.f32.mrf.mxu1  ;;  %v1505_v9 = vpop.f32.mrf.mxu0 }
 0x208   : > { %v1553_v12 = vadd.f32 %v1505_v9, %v1395_v7 }
 0x209   : > { %v1393_v51 = vpop.f32.mrf.mxu1  ;;  %v1507_v15 = vpop.f32.mrf.mxu0 }
 0x20a   : > { %v1577_v28 = vmul.f32 %v1553_v12, %v1553_v12  ;;  %v1554_v29 = vadd.f32 %v1507_v15, %v1396_v11  ;;  %v1568_v30 = vsel %vm537_vm14, %v1553_v12, 0.0 }
 0x20b   : > { %v1509_v18 = vpop.f32.mrf.mxu0  ;;  %v1546_v56 = vpop.f32.mrf.mxu1 }
 0x20c   : > { %v1561_v31 = vcombine.low %v1553_v12, %v1554_v29  ;;  %v1569_v21 = vsel %vm537_vm14, %v1554_v29, 0.0  ;;  %v1578_v58 = vmul.f32 %v1554_v29, %v1554_v29  ;;  %v1555_v16 = vadd.f32 %v1546_v56, %v1397_v27 }
 0x20d   : > { %v1510_v17 = vpop.f32.mrf.mxu0  ;;  %v1548_v22 = vpop.f32.mrf.mxu1  ;;  %v1570_v23 = vadd.f32 %v1569_v21, %v1568_v30  ;;  %v1581_v19 = vsel %vm537_vm14, %v1577_v28, 0.0 }
 0x20e   : > { %1565 = vst [vmem:[%s177_s27] sm:$0xff] %v1561_v31  ;;  %v1579_v32 = vmul.f32 %v1555_v16, %v1555_v16  ;;  %v1556_v20 = vadd.f32 %v1548_v22, %v1398_v14  ;;  %v1571_v33 = vsel %vm537_vm14, %v1555_v16, 0.0  ;;  %v1582_v26 = vsel %vm537_vm14, %v1578_v58, 0.0 }
 0x20f   : > { %v1550_v34 = vpop.f32.mrf.mxu1  ;;  %v1572_v35 = vadd.f32 %v1571_v33, %v1570_v23  ;;  %v1583_v36 = vadd.f32 %v1582_v26, %v1581_v19 }
 0x210   : > { %v1562_v37 = vcombine.low %v1555_v16, %v1556_v20  ;;  %v1573_v38 = vsel %vm537_vm14, %v1556_v20, 0.0  ;;  %v1580_v24 = vmul.f32 %v1556_v20, %v1556_v20  ;;  %v1584_v25 = vsel %vm537_vm14, %v1579_v32, 0.0 }
 0x211   : > { %v1551_v39 = vpop.f32.mrf.mxu1  ;;  %v1574_v40 = vadd.f32 %v1573_v38, %v1572_v35  ;;  %v1585_v41 = vadd.f32 %v1584_v25, %v1583_v36 }
 0x212   : > { %1566 = vst [vmem:[%s177_s27 + $0x8] sm:$0xff] %v1562_v37  ;;  %v1586_v43 = vsel %vm537_vm14, %v1580_v24, 0.0 }
 0x213   : > { %1575 = vadd.xlane.f32.xlu0 %v1574_v40  ;;  %v1587_v44 = vadd.f32 %v1586_v43, %v1585_v41 }
 0x215   : > { %1588 = vadd.xlane.f32.xlu1 %v1587_v44 }
 0x29c   : > { %v1576_v45 = vpop.xlane.xlu0 %1575 }
 0x29e   : > { %v1589_v46 = vpop.xlane.xlu1 %1588 }
 0x29f   : > { %v1591_v47 = vsel %vm1590_vm5, %v1576_v45, %v1589_v46 }
 0x2a0   : > { %1593 = vst.msk [vmem:[%s181_s4] sm:$0xf] %vm1592_vm10, %v1591_v47 }
 0x2a1 PF: > { %s14_s12 = sadd.s32 1, %s1803_s12  }
 0x2a2   : > { %p11_p4 = scmp.ge.s32.totalorder %s14_s12, 6  }
 0x2a4   :  { %13 = sbr.rel (!%p11_p4) target bundleno = 1 (0x1), region = 78 }

// kernel: up_forward.3
= control target key start
LH: loop header
LB: loop body
LE: loop exit
PB: predicated region body
PF: predicated region fallthrough
CT: control target
= control target key end

     0   :  { %s1880_s15 = smov 0   ;;  %s2196_s0 = inlined_call_operand.vmem [shape: f32[4,4,578], index: 0, kind: input, shape index: {}]   ;;  %s2197_s1 = inlined_call_operand.vmem [shape: f32[4,2], index: 1, kind: input, shape index: {}]   ;;  %s2198_s2 = inlined_call_operand.vmem [shape: bf16[9,4,4], index: 2, kind: input, shape index: {}]   ;;  %s2199_s3 = inlined_call_operand.vmem [shape: f32[4,4,512], index: 3, kind: output, shape index: {0}]   ;;  %s2200_s4 = inlined_call_operand.vmem [shape: f32[4,4,2], index: 4, kind: output, shape index: {1}]  }
   0x1 LB: > { %s1886_s16 = sadd.s32 4294967295, %s1838_s15   ;;  %p1751_p0 = scmp.ge.s32.totalorder %s1838_s15, 1  ;;  %s1838_s15 = sphi %s1880_s15, %s15_s15  }
   0x2   : > { %p165_p1 = scmp.lt.s32.totalorder %s1838_s15, 5 }
   0x4   : > { %p166_p2 = pnand %p1751_p0, %p165_p1 }
   0x5   : > { %s1842_s19 = smov (!%p166_p2), 2   ;;  %s1843_s20 = smov (!%p166_p2), 32  }
   0x6   : > { %169 = sbr.rel (%p166_p2) target bundleno = 689 (0x2b1), region = 32  ;;  %s1844_s21 = smov (!%p166_p2), 34  }
   0x7   : > { %s1845_s22 = smov (!%p166_p2), 64   ;;  %s1846_s23 = smov (!%p166_p2), 66  }
   0x8   : > { %s213_s24 = ssub.s32 (!%p166_p2), 0, %s1886_s16  ;;  %p212_p3 = scmp.lt.s32.totalorder (!%p166_p2), %s1886_s16, 0 }
   0x9   : > { %s1756_s25 = smin.u32 (!%p166_p2), %s1886_s16, %s213_s24  ;;  %p195_p5 = scmp.lt.s32.totalorder (!%p166_p2), %s1886_s16, 3 }
   0xa   : > { %s215_s26 = sand.u32 (!%p166_p2), 1, %s1756_s25   ;;  %s1848_s9 = smov (!%p166_p2), 127  }
   0xb   : > { %v224_v0 = vld [vmem:[%s2197_s1] sm:$0xf]  ;;  %v235_v1 = vlaneseq  ;;  %v1840_v2 = vmov 0   ;;  %v1841_v9 = vmov 1   ;;  %s216_s27 = ssub.s32 0, %s215_s26  ;;  %s2208_s16 = smov (!%p195_p5, %s1886_s16), 3 }
   0xc   : > { %1830 = vset.pattern.permute.xlu0 %v1840_v2  ;;  %489 = vmatprep.mubr.bf16.mxu0 %v1840_v2  ;;  %s2204_s27 = smov (!%p212_p3, %s216_s27), %s215_s26  ;;  %v1847_v28 = vmov 839922192   ;;  %s1806_s29 = smul.u32 20, %s2208_s16 }
   0xd   : > { %230 = vperm.xlu0 %1830, %v224_v0   ;;  %v1895_v3 = vand.u32 127, %v235_v1  ;;  %530 = vmatprep.mubr.bf16.mxu1 %v1840_v2  ;;  %v1898_v4 = vshrl.u32 %v235_v1, 7  ;;  %p1758_p4 = scmp.lt.s32.totalorder %s2204_s27, 0  ;;  %s222_s28 = sadd.s32 2, %s2204_s27  ;;  %v233_v29 = vunpack.c.l.s4 %v1847_v28 }
   0xe   : > { %s199_s8 = scalar_lea.vmem %s2196_s0, %s1806_s29  ;;  %s1849_s10 = smov 126  }
   0xf   : > { %v262_v5 = vadd.s32 128, %v1895_v3  ;;  %v329_v6 = vand.u32 31, %v1895_v3  ;;  %v263_v7 = vadd.s32 256, %v1895_v3  ;;  %v264_v8 = vadd.s32 384, %v1895_v3  ;;  %s2206_s28 = smov (!%p1758_p4, %s222_s28), %s2204_s27  ;;  %v225_v38 = vld [vmem:[%s199_s8] sm:$0xff]  ;;  %v226_v39 = vld [vmem:[%s199_s8 + $0x8] sm:$0xff] }
  0x10   : > { %v395_v11 = vsub.s32 0, %v1898_v4  ;;  %v399_v14 = vsub.s32 4, %v1898_v4  ;;  %p271_p6 = scmp.eq.s32.totalorder %s2206_s28, 0  ;;  %v234_v30 = vunpack.c.0.s8 %v233_v29  ;;  %p285_p7 = scmp.eq.s32.totalorder %s2206_s28, 1  ;;  %v265_v33 = vadd.s32 512, %v1895_v3 }
  0x11   : > { %1831 = vset.pattern.permute.xlu0 %v1841_v9  ;;  %v336_v10 = vand.u32 31, %v262_v5  ;;  %vm377_vm0 = vcmp.ne.s32.totalorder %v329_v6, 31  ;;  %v343_v12 = vand.u32 31, %v263_v7  ;;  %v350_v13 = vand.u32 31, %v264_v8  ;;  %v227_v40 = vld [vmem:[%s199_s8 + $0x10] sm:$0xf] }
  0x12   : > { %244 = vperm.xlu0 %1831, %v224_v0   ;;  %vm373_vm2 = vcmp.ne.s32.totalorder %v329_v6, 0  ;;  %s272_s30 = scalar_select %p271_p6, 1, 0  ;;  %v237_v31 = vsub.s32 %v234_v30, %v1898_v4  ;;  %vm266_vm12 = vcmp.lt.s32.totalorder %v1895_v3, 33  ;;  %vm284_vm13 = vcmp.ge.s32.totalorder %v265_v33, 545 }
  0x13   : > { %vm378_vm1 = vcmp.ne.s32.totalorder %v336_v10, 31  ;;  %vm374_vm3 = vcmp.ne.s32.totalorder %v336_v10, 0  ;;  %vm379_vm5 = vcmp.ne.s32.totalorder %v343_v12, 31  ;;  %vm380_vm6 = vcmp.ne.s32.totalorder %v350_v13, 31  ;;  %s286_s5 = scalar_select %p285_p7, 1, 0 }
  0x14   : > { %vm644_vm4 = vmpackc.low %vm378_vm1, %vm377_vm0  ;;  %vm1906_vm7 = vcmp.ne.s32.totalorder %v343_v12, 0  ;;  %vm376_vm8 = vcmp.ne.s32.totalorder %v350_v13, 0  ;;  %v273_v36 = vstv %s272_s30  ;;  %s1850_s11 = smov 96   ;;  %s1851_s12 = smov 95  }
  0x15   : > { %v646_v16 = vsel %vm644_vm4, 65537, %v1840_v2  ;;  %vm645_vm9 = vmpackc.low %vm380_vm6, %vm379_vm5  ;;  %v287_v37 = vstv %s286_s5  ;;  %vm274_vm14 = vcmp.eq.s32.totalorder %v273_v36, 1  ;;  %s1852_s13 = smov 94   ;;  %s1853_s14 = smov 63  }
  0x16   : > { %v651_v17 = vrot.slane %v646_v16, %v395_v11  ;;  %v647_v18 = vsel %vm645_vm9, 65537, %v1840_v2  ;;  %vm389_vm10 = vmpackc.low %vm374_vm3, %vm373_vm2  ;;  %v655_v21 = vrot.slane %v646_v16, %v399_v14  ;;  %vm288_vm15 = vcmp.eq.s32.totalorder %v287_v37, 1  ;;  %s1854_s17 = smov 62  }
  0x17   : > { %v663_v19 = vrot.slane %v647_v18, %v399_v14  ;;  %v391_v20 = vsel %vm389_vm10, 65537, %v1840_v2  ;;  %vm390_vm11 = vmpackc.low %vm376_vm8, %vm1906_vm7  ;;  %v659_v24 = vrot.slane %v647_v18, %v395_v11  ;;  %vm672_vm2 = vcmask 15360  }
  0x18   : > { %664 = vrot.lane.b32.xlu1 %v651_v17, %s1842_s19  ;;  %v1915_v22 = vrot.slane %v391_v20, %v399_v14  ;;  %v392_v23 = vsel %vm390_vm11, 65537, %v1840_v2  ;;  %v1921_v26 = vrot.slane %v391_v20, %v395_v11  ;;  %vm275_vm0 = vmand %vm266_vm12, %vm274_vm14  ;;  %vm817_vm8 = vcmask 261120  }
  0x19   : > { %670 = vrot.lane.b32.xlu0 %v663_v19, %s1842_s19  ;;  %v1919_v25 = vrot.slane %v392_v23, %v399_v14  ;;  %v1925_v27 = vrot.slane %v392_v23, %v395_v11  ;;  %vm293_vm1 = vmand %vm284_vm13, %vm288_vm15 }
  0x1a   : > { %vm410_vm3 = vcmp.ne.s16.totalorder %v1915_v22, 0  ;;  %vm409_vm6 = vcmp.ne.s16.totalorder %v1921_v26, 0 }
  0x1b   : > { %vm412_vm5 = vcmp.ne.s16.totalorder %v1919_v25, 0  ;;  %vm411_vm7 = vcmp.ne.s16.totalorder %v1925_v27, 0 }
  0x1c   : > { %666 = vrot.lane.b32.xlu1 %v655_v21, %s1842_s19 }
  0x1d   : > { %811 = vrot.lane.b32.xlu0 %v1915_v22, %s1843_s20 }
  0x20   : > { %668 = vrot.lane.b32.xlu1 %v659_v24, %s1842_s19 }
  0x21   : > { %815 = vrot.lane.b32.xlu0 %v1919_v25, %s1843_s20 }
  0x24   : > { %809 = vrot.lane.b32.xlu1 %v1921_v26, %s1843_s20 }
  0x25   : > { %1074 = vrot.lane.b32.xlu0 %v655_v21, %s1844_s21 }
  0x28   : > { %813 = vrot.lane.b32.xlu1 %v1925_v27, %s1843_s20 }
  0x29   : > { %1078 = vrot.lane.b32.xlu0 %v663_v19, %s1844_s21 }
  0x2c   : > { %1072 = vrot.lane.b32.xlu1 %v651_v17, %s1844_s21 }
  0x2d   : > { %1219 = vrot.lane.b32.xlu0 %v1915_v22, %s1845_s22 }
  0x30   : > { %1076 = vrot.lane.b32.xlu1 %v659_v24, %s1844_s21 }
  0x31   : > { %1223 = vrot.lane.b32.xlu0 %v1919_v25, %s1845_s22 }
  0x34   : > { %1217 = vrot.lane.b32.xlu1 %v1921_v26, %s1845_s22 }
  0x35   : > { %1479 = vrot.lane.b32.xlu0 %v651_v17, %s1846_s23 }
  0x38   : > { %1221 = vrot.lane.b32.xlu1 %v1925_v27, %s1845_s22 }
  0x39   : > { %1483 = vrot.lane.b32.xlu0 %v659_v24, %s1846_s23 }
  0x3c   : > { %1481 = vrot.lane.b32.xlu1 %v655_v21, %s1846_s23 }
  0x40   : > { %1485 = vrot.lane.b32.xlu1 %v663_v19, %s1846_s23 }
  0x88   : > { %v231_v32 = vpop.permute.xlu0 %230 }
  0x89   : > { %v238_v34 = vrot.slane %v231_v32, %v237_v31 }
  0x8a   : > { %v1949_v35 = vpop.permute.xlu1 %664 }
  0x8b   : > { %v240_v42 = vmul.f32 %v238_v34, %v225_v38  ;;  %v241_v43 = vmul.f32 %v238_v34, %v226_v39  ;;  %v242_v44 = vmul.f32 %v238_v34, %v227_v40  ;;  %vm676_vm11 = vcmp.ne.s16.totalorder %v1949_v35, 0 }
  0x8d   : > { %v245_v41 = vpop.permute.xlu0 %244 }
  0x8e   : > { %v252_v45 = vrot.slane %v245_v41, %v237_v31  ;;  %v667_v46 = vpop.permute.xlu1 %666 }
  0x8f   : > { %v673_v16 = vsel %vm672_vm2, %v1949_v35, %v667_v46 }
  0x90   : > { %v254_v47 = vadd.f32 %v252_v45, %v240_v42  ;;  %v255_v48 = vadd.f32 %v252_v45, %v241_v43  ;;  %v256_v49 = vadd.f32 %v252_v45, %v242_v44  ;;  %vm677_vm14 = vcmp.ne.s16.totalorder %v673_v16, 0 }
  0x91   : > { %v671_v59 = vpop.permute.xlu0 %670 }
  0x92   : > { %v257_v50 = vmax.f32 %v254_v47, 0.0  ;;  %v258_v51 = vmax.f32 %v255_v48, 0.0  ;;  %v259_v52 = vmax.f32 %v256_v49, 0.0  ;;  %v669_v53 = vpop.permute.xlu1 %668  ;;  %vm680_vm12 = vcmp.ne.s16.totalorder %v671_v59, 0 }
  0x93   : > { %v674_v54 = vsel %vm672_vm2, %v667_v46, %v669_v53  ;;  %v675_v20 = vsel %vm672_vm2, %v669_v53, %v671_v59  ;;  %vm1080_vm2 = vcmask 277504  }
  0x94   : > { %v311_v55 = vcombine.high %v257_v50, %v257_v50  ;;  %v312_v56 = vcombine.high %v258_v51, %v258_v51  ;;  %v315_v57 = vsel %vm275_vm0, 0.0, %v257_v50  ;;  %v319_v58 = vsel %vm293_vm1, 0.0, %v259_v52 }
  0x95   : > { %v1953_v60 = vpack.c.bf16 %v258_v51, %v258_v51  ;;  %v1955_v61 = vpack.c.bf16 %v319_v58, %v319_v58  ;;  %v1957_v62 = vpack.c.bf16 %v315_v57, %v315_v57  ;;  %vm678_vm4 = vcmp.ne.s16.totalorder %v674_v54, 0  ;;  %v812_v4 = vpop.permute.xlu0 %811 }
  0x96   : > { %v1959_v63 = vpack.c.bf16 %v311_v55, %v311_v55  ;;  %v1961_v0 = vpack.c.bf16 %v312_v56, %v312_v56  ;;  %v810_v1 = vpop.permute.xlu1 %809  ;;  %vm679_vm15 = vcmp.ne.s16.totalorder %v675_v20, 0  ;;  %v417_v20 = vld [vmem:[%s2198_s2] sm:$0x3] }
  0x97   : > { %429 = vrot.lane.b32.xlu1 %v1953_v60, %s1848_s9  ;;  %433 = vrot.lane.b32.xlu0 %v1955_v61, %s1848_s9  ;;  %v683_v6 = vsel %vm678_vm4, %v1953_v60, 0  ;;  %v1977_v8 = vsel %vm409_vm6, %v1957_v62, 0  ;;  %v1980_v9 = vsel %vm411_vm7, %v1953_v60, 0  ;;  %vm821_vm10 = vcmp.ne.s16.totalorder %v810_v1, 0 }
  0x98   : > { %v1970_v3 = vsel %vm410_vm3, %v1959_v63, 0  ;;  %v1974_v7 = vsel %vm412_vm5, %v1961_v0, 0  ;;  %v826_v13 = vsel %vm821_vm10, %v1957_v62, 0  ;;  %v681_v14 = vsel %vm676_vm11, %v1957_v62, 0 }
  0x99   : > { %v816_v12 = vpop.permute.xlu0 %815  ;;  %v685_v18 = vsel %vm680_vm12, %v1955_v61, 0  ;;  %v682_v21 = vsel %vm677_vm14, %v1959_v63, 0  ;;  %v818_v23 = vsel %vm817_vm8, %v810_v1, %v812_v4  ;;  %v684_v24 = vsel %vm679_vm15, %v1961_v0, 0 }
  0x9a   : > { %v814_v5 = vpop.permute.xlu1 %813  ;;  %vm825_vm13 = vcmp.ne.s16.totalorder %v816_v12, 0  ;;  %vm822_vm0 = vcmp.ne.s16.totalorder %v818_v23, 0  ;;  %vm1225_vm4 = vcmask 523264   ;;  %vm1487_vm14 = vcmask 539648  }
  0x9b   : > { %v819_v10 = vsel %vm817_vm8, %v812_v4, %v814_v5  ;;  %425 = vrot.lane.b32.xlu1 %v1957_v62, %s1848_s9  ;;  %697 = vrot.lane.b32.xlu0 %v683_v6, %s1849_s10  ;;  %v830_v17 = vsel %vm825_vm13, %v1955_v61, 0  ;;  %v820_v26 = vsel %vm817_vm8, %v814_v5, %v816_v12  ;;  %v827_v28 = vsel %vm822_vm0, %v1959_v63, 0 }
  0x9c   : > { %vm823_vm9 = vcmp.ne.s16.totalorder %v819_v10, 0  ;;  %vm824_vm1 = vcmp.ne.s16.totalorder %v820_v26, 0 }
  0x9d   : > { %v828_v11 = vsel %vm823_vm9, %v1953_v60, 0  ;;  %v1075_v22 = vpop.permute.xlu0 %1074  ;;  %v829_v30 = vsel %vm824_vm1, %v1961_v0, 0 }
  0x9e   : > { %v1073_v15 = vpop.permute.xlu1 %1072 }
  0x9f   : > { %842 = vrot.lane.b32.xlu1 %v828_v11, %s1850_s11  ;;  %427 = vrot.lane.b32.xlu0 %v1959_v63, %s1848_s9  ;;  %vm1084_vm3 = vcmp.ne.s16.totalorder %v1073_v15, 0  ;;  %v1081_v36 = vsel %vm1080_vm2, %v1073_v15, %v1075_v22 }
  0xa0   : > { %v1089_v34 = vsel %vm1084_vm3, %v1957_v62, 0  ;;  %vm1085_vm8 = vcmp.ne.s16.totalorder %v1081_v36, 0 }
  0xa1   : > { %v1079_v27 = vpop.permute.xlu0 %1078  ;;  %v1090_v41 = vsel %vm1085_vm8, %v1959_v63, 0  ;;  %vm703_vm8 = vcmask 1031168  }
  0xa2   : > { %v1077_v19 = vpop.permute.xlu1 %1076  ;;  %vm1088_vm9 = vcmp.ne.s16.totalorder %v1079_v27, 0 }
  0xa3   : > { %431 = vrot.lane.b32.xlu1 %v1961_v0, %s1848_s9  ;;  %956 = vrot.lane.b32.xlu0 %v1957_v62, %s1851_s12  ;;  %v1082_v32 = vsel %vm1080_vm2, %v1075_v22, %v1077_v19  ;;  %v1083_v39 = vsel %vm1080_vm2, %v1077_v19, %v1079_v27  ;;  %v1093_v40 = vsel %vm1088_vm9, %v1955_v61, 0  ;;  %vm848_vm9 = vcmask 785408  }
  0xa4   : > { %vm1086_vm6 = vcmp.ne.s16.totalorder %v1082_v32, 0  ;;  %vm1087_vm10 = vcmp.ne.s16.totalorder %v1083_v39, 0 }
  0xa5   : > { %v1220_v31 = vpop.permute.xlu0 %1219  ;;  %v1091_v37 = vsel %vm1086_vm6, %v1953_v60, 0  ;;  %v1092_v44 = vsel %vm1087_vm10, %v1961_v0, 0  ;;  %vm444_vm6 = vcmask 1041408   ;;  %vm966_vm10 = vcmask 777216  }
  0xa6   : > { %v1218_v25 = vpop.permute.xlu1 %1217 }
  0xa7   : > { %838 = vrot.lane.b32.xlu1 %v826_v13, %s1850_s11  ;;  %693 = vrot.lane.b32.xlu0 %v681_v14, %s1849_s10  ;;  %vm1229_vm5 = vcmp.ne.s16.totalorder %v1218_v25, 0  ;;  %v1226_v42 = vsel %vm1225_vm4, %v1218_v25, %v1220_v31  ;;  %v1768_v25 = vld [vmem:[%s2198_s2 + $0x4] sm:$0x3] }
  0xa8   : > { %v1234_v35 = vsel %vm1229_vm5, %v1957_v62, 0  ;;  %vm1230_vm11 = vcmp.ne.s16.totalorder %v1226_v42, 0  ;;  %vm435_vm5 = vcmask 1039360  }
  0xa9   : > { %v1224_v43 = vpop.permute.xlu0 %1223  ;;  %v1235_v46 = vsel %vm1230_vm11, %v1959_v63, 0  ;;  %vm1111_vm11 = vcmask 769024  }
  0xaa   : > { %v1222_v29 = vpop.permute.xlu1 %1221  ;;  %vm1233_vm12 = vcmp.ne.s16.totalorder %v1224_v43, 0 }
  0xab   : > { %846 = vrot.lane.b32.xlu1 %v830_v17, %s1850_s11  ;;  %701 = vrot.lane.b32.xlu0 %v685_v18, %s1849_s10  ;;  %v1227_v33 = vsel %vm1225_vm4, %v1220_v31, %v1222_v29  ;;  %v1228_v45 = vsel %vm1225_vm4, %v1222_v29, %v1224_v43  ;;  %v1238_v47 = vsel %vm1233_vm12, %v1955_v61, 0  ;;  %v543_v17 = vsel %vm444_vm6, %v1977_v8, 0 }
  0xac   : > { %vm1231_vm7 = vcmp.ne.s16.totalorder %v1227_v33, 0  ;;  %vm1232_vm13 = vcmp.ne.s16.totalorder %v1228_v45, 0  ;;  %vm1373_vm12 = vcmask 515072  }
  0xad   : > { %v1236_v38 = vsel %vm1231_vm7, %v1953_v60, 0  ;;  %v1480_v48 = vpop.permute.xlu0 %1479  ;;  %v1237_v49 = vsel %vm1232_vm13, %v1961_v0, 0  ;;  %vm440_vm7 = vcmask 31744   ;;  %vm1634_vm13 = vcmask 1043456  }
  0xae   : > { %v1482_v50 = vpop.permute.xlu1 %1481  ;;  %vm1491_vm15 = vcmp.ne.s16.totalorder %v1480_v48, 0 }
  0xaf   : > { %695 = vrot.lane.b32.xlu1 %v682_v21, %s1849_s10  ;;  %960 = vrot.lane.b32.xlu0 %v1953_v60, %s1851_s12  ;;  %v1488_v52 = vsel %vm1487_vm14, %v1480_v48, %v1482_v50  ;;  %v1496_v55 = vsel %vm1491_vm15, %v1957_v62, 0  ;;  %vm1659_vm15 = vcmask 11264  }
  0xb0   : > { %vm1492_vm0 = vcmp.ne.s16.totalorder %v1488_v52, 0 }
  0xb1   : > { %v1484_v51 = vpop.permute.xlu0 %1483  ;;  %v1497_v57 = vsel %vm1492_vm0, %v1959_v63, 0 }
  0xb2   : > { %v1489_v53 = vsel %vm1487_vm14, %v1482_v50, %v1484_v51  ;;  %v1486_v54 = vpop.permute.xlu1 %1485  ;;  %v1778_v50 = vld [vmem:[%s2198_s2 + $0x8] sm:$0x3] }
  0xb3   : > { %699 = vrot.lane.b32.xlu1 %v684_v24, %s1849_s10  ;;  %964 = vrot.lane.b32.xlu0 %v1955_v61, %s1851_s12  ;;  %vm1493_vm1 = vcmp.ne.s16.totalorder %v1489_v53, 0  ;;  %v1490_v56 = vsel %vm1487_vm14, %v1484_v51, %v1486_v54  ;;  %vm1495_vm3 = vcmp.ne.s16.totalorder %v1486_v54, 0  ;;  %s1805_s10 = sshll.u32 %s2208_s16, 4  ;;  %vm1657_vm14 = vcmask 7168  }
  0xb4   : > { %v1498_v58 = vsel %vm1493_vm1, %v1953_v60, 0  ;;  %vm1494_vm2 = vcmp.ne.s16.totalorder %v1490_v56, 0  ;;  %v1500_v1 = vsel %vm1495_vm3, %v1955_v61, 0 }
  0xb5   : > { %v1499_v59 = vsel %vm1494_vm2, %v1961_v0, 0 }
  0xb7   : > { %958 = vrot.lane.b32.xlu1 %v1959_v63, %s1851_s12  ;;  %840 = vrot.lane.b32.xlu0 %v827_v28, %s1850_s11 }
  0xbb   : > { %962 = vrot.lane.b32.xlu1 %v1961_v0, %s1851_s12  ;;  %844 = vrot.lane.b32.xlu0 %v829_v30, %s1850_s11 }
  0xbf   : > { %1101 = vrot.lane.b32.xlu1 %v1089_v34, %s1852_s13  ;;  %1246 = vrot.lane.b32.xlu0 %v1234_v35, %s1845_s22 }
  0xc3   : > { %1105 = vrot.lane.b32.xlu1 %v1091_v37, %s1852_s13  ;;  %1250 = vrot.lane.b32.xlu0 %v1236_v38, %s1845_s22  ;;  %v1773_v38 = vld [vmem:[%s2198_s2 + $0x6] sm:$0x3] }
  0xc7   : > { %1109 = vrot.lane.b32.xlu1 %v1093_v40, %s1852_s13  ;;  %1103 = vrot.lane.b32.xlu0 %v1090_v41, %s1852_s13 }
  0xcb   : > { %1363 = vrot.lane.b32.xlu1 %v1957_v62, %s1853_s14  ;;  %1107 = vrot.lane.b32.xlu0 %v1092_v44, %s1852_s13  ;;  %s204_s13 = scalar_lea.vmem %s2199_s3, %s1805_s10 }
  0xcf   : > { %1248 = vrot.lane.b32.xlu1 %v1235_v46, %s1845_s22  ;;  %1254 = vrot.lane.b32.xlu0 %v1238_v47, %s1845_s22 }
  0xd3   : > { %1252 = vrot.lane.b32.xlu1 %v1237_v49, %s1845_s22  ;;  %1365 = vrot.lane.b32.xlu0 %v1959_v63, %s1853_s14 }
  0xd7   : > { %1367 = vrot.lane.b32.xlu1 %v1953_v60, %s1853_s14  ;;  %1369 = vrot.lane.b32.xlu0 %v1961_v0, %s1853_s14 }
  0xdb   : > { %1371 = vrot.lane.b32.xlu1 %v1955_v61, %s1853_s14  ;;  %1508 = vrot.lane.b32.xlu0 %v1496_v55, %s1854_s17  ;;  %v1759_v61 = vld [vmem:[%s2198_s2 + $0x2] sm:$0x3]  ;;  %s1755_s14 = sshll.u32 %s2208_s16, 2 }
  0xdc   : > { %s208_s19 = scalar_lea.vmem %s2200_s4, %s1755_s14 }
  0xdf   : > { %1510 = vrot.lane.b32.xlu1 %v1497_v57, %s1854_s17  ;;  %1512 = vrot.lane.b32.xlu0 %v1498_v58, %s1854_s17  ;;  %v1783_v58 = vld [vmem:[%s2198_s2 + $0xa] sm:$0x3] }
  0xe3   : > { %1514 = vrot.lane.b32.xlu1 %v1499_v59, %s1854_s17  ;;  %1516 = vrot.lane.b32.xlu0 %v1500_v1, %s1854_s17 }
 0x109   : > { %v430_v62 = vpop.permute.xlu1 %429  ;;  %v434_v4 = vpop.permute.xlu0 %433 }
 0x10d   : > { %v426_v5 = vpop.permute.xlu1 %425  ;;  %v698_v6 = vpop.permute.xlu0 %697 }
 0x111   : > { %v2052_v10 = vpop.permute.xlu1 %842  ;;  %v428_v63 = vpop.permute.xlu0 %427 }
 0x112   : > { %v437_v11 = vsel %vm435_vm5, %v428_v63, %v430_v62  ;;  %v436_v60 = vsel %vm435_vm5, %v426_v5, %v428_v63 }
 0x113   : > { %1760 = vmatprep.subr.msk.bf16.mxu0 %vm444_vm6, %v437_v11  ;;  %v446_v12 = vsel %vm444_vm6, %v436_v60, 0 }
 0x114   : > { %472 = vmatpush1.bf16.msra.mxu0 %v446_v12  ;;  %v1788_v12 = vld [vmem:[%s2198_s2 + $0xc] sm:$0x3] }
 0x115   : > { %v432_v0 = vpop.permute.xlu1 %431  ;;  %v957_v13 = vpop.permute.xlu0 %956  ;;  %1764 = vmatprep.subr.msk.bf16.mxu0 %vm444_vm6, %v1970_v3  ;;  %v549_v3 = vsel %vm444_vm6, %v1980_v9, 0 }
 0x116   : > { %v439_v14 = vsel %vm435_vm5, %v432_v0, %v434_v4  ;;  %v438_v15 = vsel %vm435_vm5, %v430_v62, %v432_v0 }
 0x117   : > { %1762 = vmatprep.subr.msk.bf16.mxu1 %vm444_vm6, %v439_v14  ;;  %1761 = vmatmul.mubr.msk.bf16.vlgmr.msra.gmra.mxu0 %vm440_vm7, %v1759_v61  ;;  %v452_v16 = vsel %vm444_vm6, %v438_v15, 0 }
 0x118   : > { %513 = vmatpush1.bf16.msra.mxu1 %v452_v16  ;;  %569 = vmatpush1.bf16.msra.mxu0 %v543_v17 }
 0x119   : > { %1766 = vmatprep.subr.msk.bf16.mxu1 %vm444_vm6, %v1974_v7  ;;  %v839_v18 = vpop.permute.xlu1 %838  ;;  %v694_v19 = vpop.permute.xlu0 %693  ;;  %586 = vmatprep.mubr.bf16.mxu0 %v1840_v2 }
 0x11b   : > { %1763 = vmatmul.mubr.msk.bf16.vlgmr.msra.gmra.mxu1 %vm440_vm7, %v1759_v61 }
 0x11c   : > { %610 = vmatpush1.bf16.msra.mxu1 %v549_v3  ;;  %627 = vmatprep.mubr.bf16.mxu1 %v1840_v2 }
 0x11d   : > { %v847_v8 = vpop.permute.xlu1 %846  ;;  %v702_v21 = vpop.permute.xlu0 %701 }
 0x11f   : > { %1765 = vmatmul.mubr.msk.bf16.vlgmr.msra.gmra.mxu0 %vm440_vm7, %v417_v20 }
 0x120   : > { %755 = vmatprep.mubr.bf16.mxu0 %v1840_v2 }
 0x121   : > { %v696_v7 = vpop.permute.xlu1 %695  ;;  %v961_v22 = vpop.permute.xlu0 %960 }
 0x122   : > { %v704_v23 = vsel %vm703_vm8, %v694_v19, %v696_v7  ;;  %v705_v24 = vsel %vm703_vm8, %v696_v7, %v698_v6 }
 0x123   : > { %v712_v9 = vsel %vm444_vm6, %v704_v23, 0  ;;  %1767 = vmatmul.mubr.msk.bf16.vlgmr.msra.gmra.mxu1 %vm440_vm7, %v417_v20  ;;  %1769 = vmatprep.subr.msk.bf16.mxu0 %vm444_vm6, %v705_v24 }
 0x124   : > { %738 = vmatpush1.bf16.msra.mxu0 %v712_v9  ;;  %796 = vmatprep.mubr.bf16.mxu1 %v1840_v2 }
 0x125   : > { %v700_v26 = vpop.permute.xlu1 %699  ;;  %v965_v27 = vpop.permute.xlu0 %964 }
 0x126   : > { %v706_v28 = vsel %vm703_vm8, %v698_v6, %v700_v26  ;;  %v707_v29 = vsel %vm703_vm8, %v700_v26, %v702_v21 }
 0x127   : > { %v718_v30 = vsel %vm444_vm6, %v706_v28, 0  ;;  %1771 = vmatprep.subr.msk.bf16.mxu1 %vm444_vm6, %v707_v29  ;;  %1770 = vmatmul.mubr.msk.bf16.vlgmr.msra.gmra.mxu0 %vm440_vm7, %v1768_v25  ;;  %v1798_v28 = vld [vmem:[%s2198_s2 + $0x10] sm:$0x3] }
 0x128   : > { %779 = vmatpush1.bf16.msra.mxu1 %v718_v30  ;;  %900 = vmatprep.mubr.bf16.mxu0 %v1840_v2 }
 0x129   : > { %v959_v31 = vpop.permute.xlu1 %958  ;;  %v841_v32 = vpop.permute.xlu0 %840 }
 0x12a   : > { %v849_v33 = vsel %vm848_vm9, %v839_v18, %v841_v32  ;;  %v850_v34 = vsel %vm848_vm9, %v841_v32, %v2052_v10  ;;  %v967_v36 = vsel %vm966_vm10, %v957_v13, %v959_v31  ;;  %v968_v37 = vsel %vm966_vm10, %v959_v31, %v961_v22 }
 0x12b   : > { %v857_v35 = vsel %vm444_vm6, %v849_v33, 0  ;;  %1772 = vmatmul.mubr.msk.bf16.vlgmr.msra.gmra.mxu1 %vm440_vm7, %v1768_v25  ;;  %1774 = vmatprep.subr.msk.bf16.mxu0 %vm444_vm6, %v850_v34  ;;  %v975_v43 = vsel %vm444_vm6, %v967_v36, 0 }
 0x12c   : > { %883 = vmatpush1.bf16.msra.mxu0 %v857_v35  ;;  %941 = vmatprep.mubr.bf16.mxu1 %v1840_v2 }
 0x12d   : > { %v963_v39 = vpop.permute.xlu1 %962  ;;  %v845_v40 = vpop.permute.xlu0 %844  ;;  %1779 = vmatprep.subr.msk.bf16.mxu0 %vm444_vm6, %v968_v37 }
 0x12e   : > { %v851_v41 = vsel %vm848_vm9, %v2052_v10, %v845_v40  ;;  %v852_v42 = vsel %vm848_vm9, %v845_v40, %v847_v8  ;;  %v969_v45 = vsel %vm966_vm10, %v961_v22, %v963_v39  ;;  %v970_v46 = vsel %vm966_vm10, %v963_v39, %v965_v27  ;;  %v1793_v8 = vld [vmem:[%s2198_s2 + $0xe] sm:$0x3] }
 0x12f   : > { %v863_v44 = vsel %vm444_vm6, %v851_v41, 0  ;;  %1775 = vmatmul.mubr.msk.bf16.vlgmr.msra.gmra.mxu0 %vm440_vm7, %v1773_v38  ;;  %1776 = vmatprep.subr.msk.bf16.mxu1 %vm444_vm6, %v852_v42  ;;  %v981_v49 = vsel %vm444_vm6, %v969_v45, 0 }
 0x130   : > { %924 = vmatpush1.bf16.msra.mxu1 %v863_v44  ;;  %1001 = vmatpush1.bf16.msra.mxu0 %v975_v43 }
 0x131   : > { %v1102_v47 = vpop.permute.xlu1 %1101  ;;  %v1247_v48 = vpop.permute.xlu0 %1246  ;;  %1781 = vmatprep.subr.msk.bf16.mxu1 %vm444_vm6, %v970_v46  ;;  %1018 = vmatprep.mubr.bf16.mxu0 %v1840_v2 }
 0x133   : > { %1777 = vmatmul.mubr.msk.bf16.vlgmr.msra.gmra.mxu1 %vm440_vm7, %v1773_v38 }
 0x134   : > { %1042 = vmatpush1.bf16.msra.mxu1 %v981_v49  ;;  %1059 = vmatprep.mubr.bf16.mxu1 %v1840_v2 }
 0x135   : > { %v1106_v51 = vpop.permute.xlu1 %1105  ;;  %v1251_v52 = vpop.permute.xlu0 %1250 }
 0x137   : > { %1780 = vmatmul.mubr.msk.bf16.vlgmr.msra.gmra.mxu0 %vm440_vm7, %v1778_v50 }
 0x138   : > { %1163 = vmatprep.mubr.bf16.mxu0 %v1840_v2 }
 0x139   : > { %v1110_v53 = vpop.permute.xlu1 %1109  ;;  %v1104_v54 = vpop.permute.xlu0 %1103 }
 0x13a   : > { %v1112_v55 = vsel %vm1111_vm11, %v1102_v47, %v1104_v54  ;;  %v1113_v56 = vsel %vm1111_vm11, %v1104_v54, %v1106_v51 }
 0x13b   : > { %v1120_v57 = vsel %vm444_vm6, %v1112_v55, 0  ;;  %1782 = vmatmul.mubr.msk.bf16.vlgmr.msra.gmra.mxu1 %vm440_vm7, %v1778_v50  ;;  %1784 = vmatprep.subr.msk.bf16.mxu0 %vm444_vm6, %v1113_v56 }
 0x13c   : > { %1146 = vmatpush1.bf16.msra.mxu0 %v1120_v57  ;;  %1204 = vmatprep.mubr.bf16.mxu1 %v1840_v2 }
 0x13d   : > { %v1364_v59 = vpop.permute.xlu1 %1363  ;;  %v1108_v1 = vpop.permute.xlu0 %1107 }
 0x13e   : > { %v1114_v62 = vsel %vm1111_vm11, %v1106_v51, %v1108_v1  ;;  %v1115_v4 = vsel %vm1111_vm11, %v1108_v1, %v1110_v53 }
 0x13f   : > { %v1126_v5 = vsel %vm444_vm6, %v1114_v62, 0  ;;  %1785 = vmatmul.mubr.msk.bf16.vlgmr.msra.gmra.mxu0 %vm440_vm7, %v1783_v58  ;;  %1786 = vmatprep.subr.msk.bf16.mxu1 %vm444_vm6, %v1115_v4 }
 0x140   : > { %1187 = vmatpush1.bf16.msra.mxu1 %v1126_v5  ;;  %1307 = vmatprep.mubr.bf16.mxu0 %v1840_v2 }
 0x141   : > { %v1249_v6 = vpop.permute.xlu1 %1248  ;;  %v1255_v10 = vpop.permute.xlu0 %1254 }
 0x142   : > { %v1256_v63 = vsel %vm1225_vm4, %v1247_v48, %v1249_v6  ;;  %v1257_v11 = vsel %vm1225_vm4, %v1249_v6, %v1251_v52 }
 0x143   : > { %v1264_v60 = vsel %vm444_vm6, %v1256_v63, 0  ;;  %1789 = vmatprep.subr.msk.bf16.mxu0 %vm444_vm6, %v1257_v11  ;;  %1787 = vmatmul.mubr.msk.bf16.vlgmr.msra.gmra.mxu1 %vm440_vm7, %v1783_v58 }
 0x144   : > { %1290 = vmatpush1.bf16.msra.mxu0 %v1264_v60  ;;  %1348 = vmatprep.mubr.bf16.mxu1 %v1840_v2 }
 0x145   : > { %v1253_v61 = vpop.permute.xlu1 %1252  ;;  %v1366_v0 = vpop.permute.xlu0 %1365 }
 0x146   : > { %v1258_v13 = vsel %vm1225_vm4, %v1251_v52, %v1253_v61  ;;  %v1259_v14 = vsel %vm1225_vm4, %v1253_v61, %v1255_v10  ;;  %v1374_v16 = vsel %vm1373_vm12, %v1364_v59, %v1366_v0  ;;  %vm1518_vm4 = vcmask 506880  }
 0x147   : > { %v1270_v15 = vsel %vm444_vm6, %v1258_v13, 0  ;;  %1791 = vmatprep.subr.msk.bf16.mxu1 %vm444_vm6, %v1259_v14  ;;  %1790 = vmatmul.mubr.msk.bf16.vlgmr.msra.gmra.mxu0 %vm440_vm7, %v1788_v12  ;;  %v1382_v3 = vsel %vm444_vm6, %v1374_v16, 0 }
 0x148   : > { %1331 = vmatpush1.bf16.msra.mxu1 %v1270_v15  ;;  %1425 = vmatprep.mubr.bf16.mxu0 %v1840_v2 }
 0x149   : > { %v1368_v17 = vpop.permute.xlu1 %1367  ;;  %v1370_v18 = vpop.permute.xlu0 %1369 }
 0x14a   : > { %v1375_v19 = vsel %vm1373_vm12, %v1366_v0, %v1368_v17  ;;  %v1376_v20 = vsel %vm1373_vm12, %v1368_v17, %v1370_v18 }
 0x14b   : > { %1794 = vmatprep.subr.msk.bf16.mxu0 %vm444_vm6, %v1375_v19  ;;  %1792 = vmatmul.mubr.msk.bf16.vlgmr.msra.gmra.mxu1 %vm440_vm7, %v1788_v12  ;;  %v1388_v23 = vsel %vm444_vm6, %v1376_v20, 0 }
 0x14c   : > { %1408 = vmatpush1.bf16.msra.mxu0 %v1382_v3  ;;  %1466 = vmatprep.mubr.bf16.mxu1 %v1840_v2 }
 0x14d   : > { %v1372_v21 = vpop.permute.xlu1 %1371  ;;  %v1509_v7 = vpop.permute.xlu0 %1508 }
 0x14e   : > { %v1377_v22 = vsel %vm1373_vm12, %v1370_v18, %v1372_v21 }
 0x14f   : > { %1796 = vmatprep.subr.msk.bf16.mxu1 %vm444_vm6, %v1377_v22  ;;  %1795 = vmatmul.mubr.msk.bf16.vlgmr.msra.gmra.mxu0 %vm440_vm7, %v1793_v8 }
 0x150   : > { %1449 = vmatpush1.bf16.msra.mxu1 %v1388_v23  ;;  %1570 = vmatprep.mubr.bf16.mxu0 %v1840_v2 }
 0x151   : > { %v1511_v24 = vpop.permute.xlu1 %1510  ;;  %v1513_v9 = vpop.permute.xlu0 %1512 }
 0x152   : > { %v1519_v25 = vsel %vm1518_vm4, %v1509_v7, %v1511_v24  ;;  %v1520_v26 = vsel %vm1518_vm4, %v1511_v24, %v1513_v9 }
 0x153   : > { %v1527_v27 = vsel %vm444_vm6, %v1519_v25, 0  ;;  %1797 = vmatmul.mubr.msk.bf16.vlgmr.msra.gmra.mxu1 %vm440_vm7, %v1793_v8  ;;  %1799 = vmatprep.subr.msk.bf16.mxu0 %vm444_vm6, %v1520_v26 }
 0x154   : > { %1553 = vmatpush1.bf16.msra.mxu0 %v1527_v27  ;;  %1611 = vmatprep.mubr.bf16.mxu1 %v1840_v2 }
 0x155   : > { %v1515_v29 = vpop.permute.xlu1 %1514  ;;  %v1517_v30 = vpop.permute.xlu0 %1516 }
 0x156   : > { %v1521_v31 = vsel %vm1518_vm4, %v1513_v9, %v1515_v29  ;;  %v1522_v32 = vsel %vm1518_vm4, %v1515_v29, %v1517_v30 }
 0x157   : > { %v1533_v33 = vsel %vm444_vm6, %v1521_v31, 0  ;;  %1800 = vmatmul.mubr.msk.bf16.vlgmr.msra.gmra.mxu0 %vm440_vm7, %v1798_v28  ;;  %1801 = vmatprep.subr.msk.bf16.mxu1 %vm444_vm6, %v1522_v32 }
 0x158   : > { %1594 = vmatpush1.bf16.msra.mxu1 %v1533_v33 }
 0x15b   : > { %1802 = vmatmul.mubr.msk.bf16.vlgmr.msra.gmra.mxu1 %vm440_vm7, %v1798_v28 }
 0x1d7   : > { %v491_v34 = vpop.f32.mrf.mxu0 }
 0x1d9   : > { %v493_v35 = vpop.f32.mrf.mxu0 }
 0x1db   : > { %v532_v36 = vpop.f32.mrf.mxu1  ;;  %v495_v37 = vpop.f32.mrf.mxu0 }
 0x1dd   : > { %v534_v2 = vpop.f32.mrf.mxu1  ;;  %v496_v38 = vpop.f32.mrf.mxu0 }
 0x1df   : > { %v536_v39 = vpop.f32.mrf.mxu1  ;;  %v588_v40 = vpop.f32.mrf.mxu0 }
 0x1e0   : > { %v589_v7 = vadd.f32 %v588_v40, %v491_v34 }
 0x1e1   : > { %v537_v41 = vpop.f32.mrf.mxu1  ;;  %v590_v42 = vpop.f32.mrf.mxu0 }
 0x1e2   : > { %v591_v24 = vadd.f32 %v590_v42, %v493_v35 }
 0x1e3   : > { %v629_v43 = vpop.f32.mrf.mxu1  ;;  %v592_v44 = vpop.f32.mrf.mxu0 }
 0x1e4   : > { %v630_v27 = vadd.f32 %v629_v43, %v532_v36 }
 0x1e5   : > { %v631_v45 = vpop.f32.mrf.mxu1  ;;  %v593_v46 = vpop.f32.mrf.mxu0 }
 0x1e6   : > { %v632_v30 = vadd.f32 %v631_v45, %v534_v2 }
 0x1e7   : > { %v633_v47 = vpop.f32.mrf.mxu1  ;;  %v757_v48 = vpop.f32.mrf.mxu0 }
 0x1e8   : > { %v805_v9 = vadd.f32 %v757_v48, %v589_v7 }
 0x1e9   : > { %v634_v49 = vpop.f32.mrf.mxu1  ;;  %v759_v50 = vpop.f32.mrf.mxu0 }
 0x1ea   : > { %v806_v28 = vadd.f32 %v759_v50, %v591_v24 }
 0x1eb   : > { %v798_v51 = vpop.f32.mrf.mxu1  ;;  %v761_v52 = vpop.f32.mrf.mxu0 }
 0x1ec   : > { %v807_v33 = vadd.f32 %v798_v51, %v630_v27 }
 0x1ed   : > { %v800_v53 = vpop.f32.mrf.mxu1  ;;  %v762_v54 = vpop.f32.mrf.mxu0 }
 0x1ee   : > { %v808_v39 = vadd.f32 %v800_v53, %v632_v30 }
 0x1ef   : > { %v802_v55 = vpop.f32.mrf.mxu1  ;;  %v902_v56 = vpop.f32.mrf.mxu0 }
 0x1f0   : > { %v950_v29 = vadd.f32 %v902_v56, %v805_v9 }
 0x1f1   : > { %v803_v57 = vpop.f32.mrf.mxu1  ;;  %v904_v58 = vpop.f32.mrf.mxu0 }
 0x1f2   : > { %v951_v37 = vadd.f32 %v904_v58, %v806_v28 }
 0x1f3   : > { %v906_v59 = vpop.f32.mrf.mxu0  ;;  %v943_v1 = vpop.f32.mrf.mxu1 }
 0x1f4   : > { %v952_v46 = vadd.f32 %v943_v1, %v807_v33 }
 0x1f5   : > { %v907_v62 = vpop.f32.mrf.mxu0  ;;  %v945_v4 = vpop.f32.mrf.mxu1 }
 0x1f6   : > { %v953_v47 = vadd.f32 %v945_v4, %v808_v39 }
 0x1f7   : > { %v947_v5 = vpop.f32.mrf.mxu1  ;;  %v1020_v6 = vpop.f32.mrf.mxu0 }
 0x1f8   : > { %v1068_v38 = vadd.f32 %v1020_v6, %v950_v29 }
 0x1f9   : > { %v948_v10 = vpop.f32.mrf.mxu1  ;;  %v1022_v63 = vpop.f32.mrf.mxu0 }
 0x1fa   : > { %v1069_v34 = vadd.f32 %v1022_v63, %v951_v37 }
 0x1fb   : > { %v1024_v11 = vpop.f32.mrf.mxu0  ;;  %v1061_v60 = vpop.f32.mrf.mxu1 }
 0x1fc   : > { %v1070_v48 = vadd.f32 %v1061_v60, %v952_v46 }
 0x1fd   : > { %v1025_v12 = vpop.f32.mrf.mxu0  ;;  %v1063_v61 = vpop.f32.mrf.mxu1 }
 0x1fe   : > { %v1071_v49 = vadd.f32 %v1063_v61, %v953_v47 }
 0x1ff   : > { %v1065_v0 = vpop.f32.mrf.mxu1  ;;  %v1165_v13 = vpop.f32.mrf.mxu0 }
 0x200   : > { %v1213_v40 = vadd.f32 %v1165_v13, %v1068_v38 }
 0x201   : > { %v1066_v14 = vpop.f32.mrf.mxu1  ;;  %v1167_v15 = vpop.f32.mrf.mxu0 }
 0x202   : > { %v1214_v36 = vadd.f32 %v1167_v15, %v1069_v34 }
 0x203   : > { %v1169_v16 = vpop.f32.mrf.mxu0  ;;  %v1206_v17 = vpop.f32.mrf.mxu1 }
 0x204   : > { %v1215_v50 = vadd.f32 %v1206_v17, %v1070_v48 }
 0x205   : > { %v1170_v18 = vpop.f32.mrf.mxu0  ;;  %v1208_v19 = vpop.f32.mrf.mxu1 }
 0x206   : > { %v1216_v54 = vadd.f32 %v1208_v19, %v1071_v49 }
 0x207   : > { %v1210_v3 = vpop.f32.mrf.mxu1  ;;  %v1309_v20 = vpop.f32.mrf.mxu0 }
 0x208   : > { %v1357_v43 = vadd.f32 %v1309_v20, %v1213_v40 }
 0x209   : > { %v1211_v8 = vpop.f32.mrf.mxu1  ;;  %v1311_v21 = vpop.f32.mrf.mxu0 }
 0x20a   : > { %v1358_v51 = vadd.f32 %v1311_v21, %v1214_v36 }
 0x20b   : > { %v1313_v22 = vpop.f32.mrf.mxu0  ;;  %v1350_v23 = vpop.f32.mrf.mxu1 }
 0x20c   : > { %v1359_v56 = vadd.f32 %v1350_v23, %v1215_v50 }
 0x20d   : > { %v1314_v25 = vpop.f32.mrf.mxu0  ;;  %v1352_v26 = vpop.f32.mrf.mxu1 }
 0x20e   : > { %v1360_v59 = vadd.f32 %v1352_v26, %v1216_v54 }
 0x20f   : > { %v1354_v31 = vpop.f32.mrf.mxu1  ;;  %v1427_v32 = vpop.f32.mrf.mxu0 }
 0x210   : > { %v1475_v52 = vadd.f32 %v1427_v32, %v1357_v43 }
 0x211   : > { %v1355_v41 = vpop.f32.mrf.mxu1  ;;  %v1429_v44 = vpop.f32.mrf.mxu0 }
 0x212   : > { %v1476_v57 = vadd.f32 %v1429_v44, %v1358_v51 }
 0x213   : > { %v1431_v35 = vpop.f32.mrf.mxu0  ;;  %v1468_v42 = vpop.f32.mrf.mxu1 }
 0x214   : > { %v1477_v4 = vadd.f32 %v1468_v42, %v1359_v56 }
 0x215   : > { %v1432_v2 = vpop.f32.mrf.mxu0  ;;  %v1470_v45 = vpop.f32.mrf.mxu1 }
 0x216   : > { %v1478_v10 = vadd.f32 %v1470_v45, %v1360_v59 }
 0x217   : > { %v1472_v53 = vpop.f32.mrf.mxu1  ;;  %v1572_v55 = vpop.f32.mrf.mxu0 }
 0x218   : > { %v1620_v58 = vadd.f32 %v1572_v55, %v1475_v52 }
 0x219   : > { %v1473_v1 = vpop.f32.mrf.mxu1  ;;  %v1574_v62 = vpop.f32.mrf.mxu0 }
 0x21a   : > { %v1644_v5 = vmul.f32 %v1620_v58, %v1620_v58  ;;  %v1621_v6 = vadd.f32 %v1574_v62, %v1476_v57  ;;  %v1635_v63 = vsel %vm1634_vm13, %v1620_v58, 0.0 }
 0x21b   : > { %v1576_v11 = vpop.f32.mrf.mxu0  ;;  %v1613_v60 = vpop.f32.mrf.mxu1 }
 0x21c   : > { %v1628_v12 = vcombine.low %v1620_v58, %v1621_v6  ;;  %v1636_v61 = vsel %vm1634_vm13, %v1621_v6, 0.0  ;;  %v1645_v0 = vmul.f32 %v1621_v6, %v1621_v6  ;;  %v1622_v13 = vadd.f32 %v1613_v60, %v1477_v4 }
 0x21d   : > { %v1577_v14 = vpop.f32.mrf.mxu0  ;;  %v1615_v15 = vpop.f32.mrf.mxu1  ;;  %v1637_v16 = vadd.f32 %v1636_v61, %v1635_v63  ;;  %v1648_v17 = vsel %vm1634_vm13, %v1644_v5, 0.0 }
 0x21e   : > { %1632 = vst [vmem:[%s204_s13] sm:$0xff] %v1628_v12  ;;  %v1646_v18 = vmul.f32 %v1622_v13, %v1622_v13  ;;  %v1623_v19 = vadd.f32 %v1615_v15, %v1478_v10  ;;  %v1638_v3 = vsel %vm1634_vm13, %v1622_v13, 0.0  ;;  %v1649_v20 = vsel %vm1634_vm13, %v1645_v0, 0.0 }
 0x21f   : > { %v1617_v8 = vpop.f32.mrf.mxu1  ;;  %v1639_v21 = vadd.f32 %v1638_v3, %v1637_v16  ;;  %v1650_v7 = vadd.f32 %v1649_v20, %v1648_v17 }
 0x220   : > { %v1629_v22 = vcombine.low %v1622_v13, %v1623_v19  ;;  %v1640_v23 = vsel %vm1634_vm13, %v1623_v19, 0.0  ;;  %v1647_v24 = vmul.f32 %v1623_v19, %v1623_v19  ;;  %v1651_v9 = vsel %vm1634_vm13, %v1646_v18, 0.0 }
 0x221   : > { %v1618_v25 = vpop.f32.mrf.mxu1  ;;  %v1641_v26 = vadd.f32 %v1640_v23, %v1639_v21  ;;  %v1652_v27 = vadd.f32 %v1651_v9, %v1650_v7 }
 0x222   : > { %1633 = vst [vmem:[%s204_s13 + $0x8] sm:$0xff] %v1629_v22  ;;  %v1653_v28 = vsel %vm1634_vm13, %v1647_v24, 0.0 }
 0x223   : > { %1642 = vadd.xlane.f32.xlu1 %v1641_v26  ;;  %v1654_v29 = vadd.f32 %v1653_v28, %v1652_v27 }
 0x225   : > { %1655 = vadd.xlane.f32.xlu0 %v1654_v29 }
 0x2ac   : > { %v1643_v30 = vpop.xlane.xlu1 %1642 }
 0x2ae   : > { %v1656_v31 = vpop.xlane.xlu0 %1655 }
 0x2af   : > { %v1658_v32 = vsel %vm1657_vm14, %v1643_v30, %v1656_v31 }
 0x2b0   : > { %1660 = vst.msk [vmem:[%s208_s19] sm:$0xf] %vm1659_vm15, %v1658_v32 }
 0x2b1 PF: > { %s15_s15 = sadd.s32 1, %s1838_s15  }
 0x2b2   : > { %p12_p8 = scmp.ge.s32.totalorder %s15_s15, 6  }
 0x2b4   :  { %14 = sbr.rel (!%p12_p8) target bundleno = 1 (0x1), region = 82 }

</bundles_post_ra>
